<compile_context>
chip_gen: v7x
topology: tpu7x:2x2x1
jax: 0.10.0
libtpu: 0.0.40
codegen_flags: <defaults>
</compile_context>

<pallas_src>
import numpy as np
import jax
import jax.numpy as jnp
from jax import lax
from jax.experimental import pallas as pl
from jax.experimental.pallas import tpu as pltpu


# ----------------------------------------------------------------------------- kernel
def _lfem_kernel(x_ref, t_ref, bias_ref, out_ref, pad_ref, imcol_ref):
    """One grid step = one batch element.

    x_ref    : (1, D, H, W*C)    f32  lane-dense (w, c) packed input
    t_ref    : (7, 7*W*C, W*Co)  bf16 folded taps (constant index map -> VMEM-resident)
    bias_ref : (1, W*Co)         f32  folded bias, tiled over W in the lane dim
    out_ref  : (1, D, H, W*Co)   output block
    pad_ref  : (D+6, HPAD, W*C)  f32  zero-halo scratch (HPAD = H+6 rounded up to 8)
    imcol_ref: (D+6, H, 7*W*C)   f32  kh-im2col scratch (built once per batch)
    """
    _, D, H, WC = x_ref.shape
    NL = out_ref.shape[3]           # W * Co output lanes
    KIM = imcol_ref.shape[2]        # 7 * W * C contracting dim

    # ---- zero-halo input in VMEM (D/H halo here; W halo is folded into the taps).
    # Re-zeroed every step: safe under batch sharding across v7x cores, and cheap.
    pad_ref[...] = jnp.zeros_like(pad_ref)
    pad_ref[pl.ds(3, D), pl.ds(3, H), :] = x_ref[0]

    # ---- kh im2col, built once per batch: lane block hh holds pad[:, hh:hh+H, :].
    # 7 copies here replace the 49 sublane-misaligned slice+reshape relayouts that
    # previously sat inside the tap loop.
    for hh in range(7):  # static unroll
        imcol_ref[:, :, pl.ds(hh * WC, WC)] = pad_ref[:, pl.ds(hh, H), :]

    # ---- kd reduction: 7 lane-dense (D*H, KIM) @ (KIM, NL) MXU matmuls.
    # fori_loop (not unrolled) bounds LHS live ranges; the f32 accumulator is the
    # loop carry (8 vregs), so there is no VMEM accumulator RMW.
    def kd_step(kd, acc):
        lhs = imcol_ref[pl.ds(kd, D), :, :]          # tile-aligned D slice, no relayout
        lhs = lhs.reshape(D * H, KIM).astype(jnp.bfloat16)
        return acc + jnp.dot(lhs, t_ref[kd], preferred_element_type=jnp.float32)

    acc = lax.fori_loop(0, 7, kd_step, jnp.zeros((D * H, NL), jnp.float32))

    out_ref[...] = (acc + bias_ref[...]).reshape(1, D, H, NL).astype(out_ref.dtype)


# ----------------------------------------------------------------------- weight folding
def _build_tap_weights(params, C, Co, W):
    """Fold depthwise(3/5/7) + pointwise + 1x1 convs (and all biases) into 49 tap
    matrices T[kd,kh] of shape (W*C, W*Co), stacked along kh into (7, 7*W*C, W*Co),
    plus one effective bias.  One-time host-side weight prep (numpy)."""
    w1 = np.asarray(params['w_1'], np.float32)             # (3C, Co)
    bias = np.asarray(params['b_1'], np.float32).copy()    # (Co,)
    T = np.zeros((7, 7, W * C, W * Co), np.float32)

    for bi, S in enumerate((3, 5, 7)):
        P = (S - 1) // 2
        off = 3 - P                                          # placement into the halo-3 grid
        w_dw = np.asarray(params[f'w_dw{S}'], np.float32)    # (S,S,S,C)
        b_dw = np.asarray(params[f'b_dw{S}'], np.float32)    # (C,)
        w_pw = np.asarray(params[f'w_pw{S}'], np.float32)    # (C,C)
        b_pw = np.asarray(params[f'b_pw{S}'], np.float32)    # (C,)
        w1_b = w1[bi * C:(bi + 1) * C]                       # (C, Co)
        A = w_pw @ w1_b                                      # effective channel mix
        bias = bias + b_pw @ w1_b + b_dw @ A

        for kd in range(S):
            for kh in range(S):
                for wo in range(W):
                    for kw in range(S):
                        wi = wo + kw - P
                        if 0 <= wi < W:                      # W zero-pad folded in
                            T[kd + off, kh + off,
                              wi * C:(wi + 1) * C,
                              wo * Co:(wo + 1) * Co] += w_dw[kd, kh, kw][:, None] * A

    # stack kh into the contracting dim: T_stacked[kd, hh*WC + i, n] = T[kd, hh, i, n]
    T_stacked = T.reshape(7, 7 * W * C, W * Co)
    bias_lanes = np.tile(bias, W).reshape(1, W * Co)
    # bf16 taps (native MXU dtype on v5e/v6e/v7x); accumulation stays f32 in-kernel.
    return jnp.asarray(T_stacked, jnp.bfloat16), jnp.asarray(bias_lanes, jnp.float32)


# ----------------------------------------------------------------------------- wrapper
def local_feature_extraction_ndhwc(x, params):
    """x: (B, D, H, W, C) float32 -> (B, D, H, W, Co)."""
    B, D, H, W, C = x.shape
    Co = params['b_1'].shape[0]
    WC, NL = W * C, W * Co
    KIM = 7 * WC
    HPAD = ((H + 6 + 7) // 8) * 8          # halo-H rounded to a sublane multiple

    T_stacked, bias_lanes = _build_tap_weights(params, C, Co, W)
    x_packed = x.reshape(B, D, H, WC)      # lane-dense (w, c) packing

    out_packed = pl.pallas_call(
        _lfem_kernel,
        out_shape=jax.ShapeDtypeStruct((B, D, H, NL), x.dtype),
        grid=(B,),
        in_specs=[
            pl.BlockSpec((1, D, H, WC), lambda b: (b, 0, 0, 0)),   # x: one DMA per batch
            pl.BlockSpec((7, KIM, NL), lambda b: (0, 0, 0)),       # taps: constant index -> resident
            pl.BlockSpec((1, NL), lambda b: (0, 0)),               # folded bias
        ],
        out_specs=pl.BlockSpec((1, D, H, NL), lambda b: (b, 0, 0, 0)),
        scratch_shapes=[
            pltpu.VMEM((D + 6, HPAD, WC), jnp.float32),    # zero-halo input
            pltpu.VMEM((D + 6, H, KIM), jnp.float32),      # kh im2col
        ],
        compiler_params=pltpu.CompilerParams(
            dimension_semantics=("parallel",)),            # v7x: 2 TCs split the batch
    )(x_packed, T_stacked, bias_lanes)

    return out_packed.reshape(B, D, H, W, Co)


# ------------------------------------------------------------------------------ params
def init_params(key, C, Co):
    """Deterministic synthetic parameters (shapes match LocalFeatureExtractionModule)."""
    ks = jax.random.split(key, 10)

    def w(k, shape, fan_in):
        return jax.random.normal(k, shape, jnp.float32) / jnp.sqrt(float(fan_in))

    p = {}
    for i, S in enumerate((3, 5, 7)):
        # depthwise Conv3d(C, C, S, padding=(S-1)//2, groups=C): per-channel (S,S,S) taps
        p[f'w_dw{S}'] = w(ks[3 * i + 0], (S, S, S, C), S ** 3)
        p[f'b_dw{S}'] = 0.02 * jax.random.normal(ks[3 * i + 1], (C,), jnp.float32)
        # pointwise Conv3d(C, C, 1) stored as (Cin, Cout)
        p[f'w_pw{S}'] = w(ks[3 * i + 2], (C, C), C)
        p[f'b_pw{S}'] = jnp.full((C,), 0.01, jnp.float32)
    # conv_1x1: Conv3d(3C, Co, 1) stored as (3C, Co)
    p['w_1'] = w(ks[9], (3 * C, Co), 3 * C)
    p['b_1'] = jnp.full((Co,), 0.01, jnp.float32)
    return p


# --------------------------------------------------------------------------- reference
def reference_ndhwc(x, params):
    """Pure-JAX (f32) faithful reference of the PyTorch forward (NDHWC)."""
    C = x.shape[-1]

    def dwconv(t, wgt, b, S):
        P = (S - 1) // 2
        y = lax.conv_general_dilated(
            t, wgt.reshape(S, S, S, 1, C), (1, 1, 1),
            ((P, P), (P, P), (P, P)),
            dimension_numbers=('NDHWC', 'DHWIO', 'NDHWC'),
            feature_group_count=C)
        return y + b.reshape(1, 1, 1, 1, -1)

    def pwconv(t, wgt, b):
        return jnp.einsum('bdhwc,co->bdhwo', t, wgt) + b.reshape(1, 1, 1, 1, -1)

    branches = []
    for S in (3, 5, 7):
        y = dwconv(x, params[f'w_dw{S}'], params[f'b_dw{S}'], S)
        branches.append(pwconv(y, params[f'w_pw{S}'], params[f'b_pw{S}']))
    cat = jnp.concatenate(branches, axis=-1)
    return (jnp.einsum('bdhwc,co->bdhwo', cat, params['w_1'])
            + params['b_1'].reshape(1, 1, 1, 1, -1))


# --------------------------------------------------------------------------------- main
if __name__ == "__main__":
    key = jax.random.PRNGKey(0)
    kx, kp = jax.random.split(key)

    # PyTorch-style input: NCDHW = (batch=2, channels=16, d=8, h=8, w=8), out_channels=16
    B, C, D, H, W = 2, 16, 8, 8, 8
    Co = 16
    x_ncdhw = jax.random.normal(kx, (B, C, D, H, W), jnp.float32)
    x = jnp.transpose(x_ncdhw, (0, 2, 3, 4, 1))  # -> NDHWC kernel layout

    params = init_params(kp, C, Co)

    out = local_feature_extraction_ndhwc(x, params)
    out = jax.block_until_ready(out)

    ref = reference_ndhwc(x, params)
    err = float(jnp.max(jnp.abs(out - ref)))
    # bf16 taps / LHS with f32 accumulation: tolerance loosened vs. the pure-f32 path.
    assert err < 4e-2, f"kernel/reference mismatch: max abs err = {err}"
    print("KERNEL_OK")
</pallas_src>

<mosaic_0001>
module attributes {stable_mosaic.version = 11 : i64} {
  func.func @_lfem_kernel(%arg0: i32, %arg1: memref<1x8x8x128xf32, #tpu.memory_space<vmem>>, %arg2: memref<7x896x128xbf16, #tpu.memory_space<vmem>>, %arg3: memref<1x128xf32, #tpu.memory_space<vmem>>, %arg4: memref<1x8x8x128xf32, #tpu.memory_space<vmem>>, %arg5: memref<14x16x128xf32, #tpu.memory_space<vmem>>, %arg6: memref<14x8x896xf32, #tpu.memory_space<vmem>>) attributes {dimension_semantics = [#tpu.dimension_semantics<parallel>], iteration_bounds = array<i64: 2>, scalar_prefetch = 0 : i64, scratch_operands = 2 : i64, tpu.core_type = #tpu.core_type<tc>, window_params = [{transform_indices = @transform_0, window_bounds = array<i64: 1, 8, 8, 128>}, {pipeline_mode = #tpu.pipeline_mode<synchronous>, transform_indices = @transform_1, window_bounds = array<i64: 7, 896, 128>}, {pipeline_mode = #tpu.pipeline_mode<synchronous>, transform_indices = @transform_2, window_bounds = array<i64: 1, 128>}, {transform_indices = @transform_3, window_bounds = array<i64: 1, 8, 8, 128>}]} {
    %cst = arith.constant 0.000000e+00 : f32
    %0 = vector.broadcast %cst : f32 to vector<14x16x128xf32>
    %c0 = arith.constant 0 : index
    %c0_0 = arith.constant 0 : index
    %c0_1 = arith.constant 0 : index
    %1 = vector.load %arg5[%c0, %c0_0, %c0_1] : memref<14x16x128xf32, #tpu.memory_space<vmem>>, vector<14x16x128xf32>
    tpu.vector_store %arg5[%c0, %c0_0, %c0_1], %0 {strides = array<i32>} : memref<14x16x128xf32, #tpu.memory_space<vmem>>, vector<14x16x128xf32>,
    %c0_2 = arith.constant 0 : index
    %c0_3 = arith.constant 0 : index
    %c0_4 = arith.constant 0 : index
    %c0_5 = arith.constant 0 : index
    %2 = vector.load %arg1[%c0_2, %c0_3, %c0_4, %c0_5] : memref<1x8x8x128xf32, #tpu.memory_space<vmem>>, vector<1x8x8x128xf32>
    %3 = vector.shape_cast %2 : vector<1x8x8x128xf32> to vector<8x8x128xf32>
    %c3 = arith.constant 3 : index
    %c3_6 = arith.constant 3 : index
    %c0_7 = arith.constant 0 : index
    %4 = vector.load %arg5[%c3, %c3_6, %c0_7] : memref<14x16x128xf32, #tpu.memory_space<vmem>>, vector<8x8x128xf32>
    tpu.vector_store %arg5[%c3, %c3_6, %c0_7], %3 {strides = array<i32>} : memref<14x16x128xf32, #tpu.memory_space<vmem>>, vector<8x8x128xf32>,
    %c0_8 = arith.constant 0 : index
    %c0_9 = arith.constant 0 : index
    %c0_10 = arith.constant 0 : index
    %5 = vector.load %arg5[%c0_8, %c0_9, %c0_10] : memref<14x16x128xf32, #tpu.memory_space<vmem>>, vector<14x8x128xf32>
    %c0_11 = arith.constant 0 : index
    %c0_12 = arith.constant 0 : index
    %c0_13 = arith.constant 0 : index
    %6 = vector.load %arg6[%c0_11, %c0_12, %c0_13] : memref<14x8x896xf32, #tpu.memory_space<vmem>>, vector<14x8x128xf32>
    tpu.vector_store %arg6[%c0_11, %c0_12, %c0_13], %5 {strides = array<i32>} : memref<14x8x896xf32, #tpu.memory_space<vmem>>, vector<14x8x128xf32>,
    %c0_14 = arith.constant 0 : index
    %c1 = arith.constant 1 : index
    %c0_15 = arith.constant 0 : index
    %7 = vector.load %arg5[%c0_14, %c1, %c0_15] : memref<14x16x128xf32, #tpu.memory_space<vmem>>, vector<14x8x128xf32>
    %c0_16 = arith.constant 0 : index
    %c0_17 = arith.constant 0 : index
    %c128 = arith.constant 128 : index
    %8 = vector.load %arg6[%c0_16, %c0_17, %c128] : memref<14x8x896xf32, #tpu.memory_space<vmem>>, vector<14x8x128xf32>
    tpu.vector_store %arg6[%c0_16, %c0_17, %c128], %7 {strides = array<i32>} : memref<14x8x896xf32, #tpu.memory_space<vmem>>, vector<14x8x128xf32>,
    %c0_18 = arith.constant 0 : index
    %c2 = arith.constant 2 : index
    %c0_19 = arith.constant 0 : index
    %9 = vector.load %arg5[%c0_18, %c2, %c0_19] : memref<14x16x128xf32, #tpu.memory_space<vmem>>, vector<14x8x128xf32>
    %c0_20 = arith.constant 0 : index
    %c0_21 = arith.constant 0 : index
    %c256 = arith.constant 256 : index
    %10 = vector.load %arg6[%c0_20, %c0_21, %c256] : memref<14x8x896xf32, #tpu.memory_space<vmem>>, vector<14x8x128xf32>
    tpu.vector_store %arg6[%c0_20, %c0_21, %c256], %9 {strides = array<i32>} : memref<14x8x896xf32, #tpu.memory_space<vmem>>, vector<14x8x128xf32>,
    %c0_22 = arith.constant 0 : index
    %c3_23 = arith.constant 3 : index
    %c0_24 = arith.constant 0 : index
    %11 = vector.load %arg5[%c0_22, %c3_23, %c0_24] : memref<14x16x128xf32, #tpu.memory_space<vmem>>, vector<14x8x128xf32>
    %c0_25 = arith.constant 0 : index
    %c0_26 = arith.constant 0 : index
    %c384 = arith.constant 384 : index
    %12 = vector.load %arg6[%c0_25, %c0_26, %c384] : memref<14x8x896xf32, #tpu.memory_space<vmem>>, vector<14x8x128xf32>
    tpu.vector_store %arg6[%c0_25, %c0_26, %c384], %11 {strides = array<i32>} : memref<14x8x896xf32, #tpu.memory_space<vmem>>, vector<14x8x128xf32>,
    %c0_27 = arith.constant 0 : index
    %c4 = arith.constant 4 : index
    %c0_28 = arith.constant 0 : index
    %13 = vector.load %arg5[%c0_27, %c4, %c0_28] : memref<14x16x128xf32, #tpu.memory_space<vmem>>, vector<14x8x128xf32>
    %c0_29 = arith.constant 0 : index
    %c0_30 = arith.constant 0 : index
    %c512 = arith.constant 512 : index
    %14 = vector.load %arg6[%c0_29, %c0_30, %c512] : memref<14x8x896xf32, #tpu.memory_space<vmem>>, vector<14x8x128xf32>
    tpu.vector_store %arg6[%c0_29, %c0_30, %c512], %13 {strides = array<i32>} : memref<14x8x896xf32, #tpu.memory_space<vmem>>, vector<14x8x128xf32>,
    %c0_31 = arith.constant 0 : index
    %c5 = arith.constant 5 : index
    %c0_32 = arith.constant 0 : index
    %15 = vector.load %arg5[%c0_31, %c5, %c0_32] : memref<14x16x128xf32, #tpu.memory_space<vmem>>, vector<14x8x128xf32>
    %c0_33 = arith.constant 0 : index
    %c0_34 = arith.constant 0 : index
    %c640 = arith.constant 640 : index
    %16 = vector.load %arg6[%c0_33, %c0_34, %c640] : memref<14x8x896xf32, #tpu.memory_space<vmem>>, vector<14x8x128xf32>
    tpu.vector_store %arg6[%c0_33, %c0_34, %c640], %15 {strides = array<i32>} : memref<14x8x896xf32, #tpu.memory_space<vmem>>, vector<14x8x128xf32>,
    %c0_35 = arith.constant 0 : index
    %c6 = arith.constant 6 : index
    %c0_36 = arith.constant 0 : index
    %17 = vector.load %arg5[%c0_35, %c6, %c0_36] : memref<14x16x128xf32, #tpu.memory_space<vmem>>, vector<14x8x128xf32>
    %c0_37 = arith.constant 0 : index
    %c0_38 = arith.constant 0 : index
    %c768 = arith.constant 768 : index
    %18 = vector.load %arg6[%c0_37, %c0_38, %c768] : memref<14x8x896xf32, #tpu.memory_space<vmem>>, vector<14x8x128xf32>
    tpu.vector_store %arg6[%c0_37, %c0_38, %c768], %17 {strides = array<i32>} : memref<14x8x896xf32, #tpu.memory_space<vmem>>, vector<14x8x128xf32>,
    %cst_39 = arith.constant 0.000000e+00 : f32
    %19 = vector.broadcast %cst_39 : f32 to vector<64x128xf32>
    %c0_i32 = arith.constant 0 : i32
    %c7_i32 = arith.constant 7 : i32
    %20 = arith.addi %c0_i32, %c7_i32 : i32
    %c1_i32 = arith.constant 1 : i32
    %21 = scf.for %arg7 = %c0_i32 to %20 step %c1_i32 iter_args(%arg8 = %19) -> (vector<64x128xf32>)  : i32 {
      %27 = arith.index_cast %arg7 : i32 to index
      %c0_47 = arith.constant 0 : index
      %c0_48 = arith.constant 0 : index
      %28 = vector.load %arg6[%27, %c0_47, %c0_48] : memref<14x8x896xf32, #tpu.memory_space<vmem>>, vector<8x8x896xf32>
      %29 = vector.shape_cast %28 : vector<8x8x896xf32> to vector<64x896xf32>
      %30 = arith.truncf %29 : vector<64x896xf32> to vector<64x896xbf16>
      %31 = arith.index_cast %arg7 : i32 to index
      %c0_49 = arith.constant 0 : index
      %c0_50 = arith.constant 0 : index
      %32 = vector.load %arg2[%31, %c0_49, %c0_50] : memref<7x896x128xbf16, #tpu.memory_space<vmem>>, vector<1x896x128xbf16>
      %33 = vector.shape_cast %32 : vector<1x896x128xbf16> to vector<896x128xbf16>
      %cst_51 = arith.constant dense<0.000000e+00> : vector<64x128xf32>
      %34 = tpu.matmul %30, %33, %cst_51 {dimension_numbers = #tpu.dot_dimension_numbers<[1], [0], [0], [1], [0, 0, 1, 1], [], []>} : vector<64x896xbf16>, vector<896x128xbf16>, vector<64x128xf32> -> vector<64x128xf32>
      %35 = arith.addf %arg8, %34 : vector<64x128xf32>
      scf.yield %35 : vector<64x128xf32>
    }
    %c7_i32_40 = arith.constant 7 : i32
    %c0_41 = arith.constant 0 : index
    %c0_42 = arith.constant 0 : index
    %22 = vector.load %arg3[%c0_41, %c0_42] : memref<1x128xf32, #tpu.memory_space<vmem>>, vector<1x128xf32>
    %23 = vector.broadcast %22 : vector<1x128xf32> to vector<64x128xf32>
    %24 = arith.addf %21, %23 : vector<64x128xf32>
    %25 = vector.shape_cast %24 : vector<64x128xf32> to vector<1x8x8x128xf32>
    %c0_43 = arith.constant 0 : index
    %c0_44 = arith.constant 0 : index
    %c0_45 = arith.constant 0 : index
    %c0_46 = arith.constant 0 : index
    %26 = vector.load %arg4[%c0_43, %c0_44, %c0_45, %c0_46] : memref<1x8x8x128xf32, #tpu.memory_space<vmem>>, vector<1x8x8x128xf32>
    tpu.vector_store %arg4[%c0_43, %c0_44, %c0_45, %c0_46], %25 {strides = array<i32>} : memref<1x8x8x128xf32, #tpu.memory_space<vmem>>, vector<1x8x8x128xf32>,
    return
  }
  func.func @transform_0(%arg0: i32) -> (i32, i32, i32, i32) {
    %c0_i32 = arith.constant 0 : i32
    %c0_i32_0 = arith.constant 0 : i32
    %c0_i32_1 = arith.constant 0 : i32
    %c0_i32_2 = arith.constant 0 : i32
    return %arg0, %c0_i32, %c0_i32_0, %c0_i32_1 : i32, i32, i32, i32
  }
  func.func @transform_1(%arg0: i32) -> (i32, i32, i32) {
    %c0_i32 = arith.constant 0 : i32
    %c0_i32_0 = arith.constant 0 : i32
    %c0_i32_1 = arith.constant 0 : i32
    %c0_i32_2 = arith.constant 0 : i32
    return %c0_i32, %c0_i32_0, %c0_i32_1 : i32, i32, i32
  }
  func.func @transform_2(%arg0: i32) -> (i32, i32) {
    %c0_i32 = arith.constant 0 : i32
    %c0_i32_0 = arith.constant 0 : i32
    %c0_i32_1 = arith.constant 0 : i32
    return %c0_i32, %c0_i32_0 : i32, i32
  }
  func.func @transform_3(%arg0: i32) -> (i32, i32, i32, i32) {
    %c0_i32 = arith.constant 0 : i32
    %c0_i32_0 = arith.constant 0 : i32
    %c0_i32_1 = arith.constant 0 : i32
    %c0_i32_2 = arith.constant 0 : i32
    return %arg0, %c0_i32, %c0_i32_0, %c0_i32_1 : i32, i32, i32, i32
  }
}

</mosaic_0001>

<bundles_post_ra>
// kernel: tpu_custom_call.1
= control target key start
LH: loop header
LB: loop body
LE: loop exit
PB: predicated region body
PF: predicated region fallthrough
CT: control target
= control target key end

     0   :  { %8 = vsyncpa [#allocation5], 0  ;;  %s2590_s0 = inlined_call_operand.hbm [shape: f32[2,8,8,128], index: 0, kind: input, shape index: {}]   ;;  %s2591_s1 = inlined_call_operand.hbm [shape: bf16[7,896,128], index: 1, kind: input, shape index: {}]   ;;  %s2592_s2 = inlined_call_operand.hbm [shape: f32[1,128], index: 2, kind: input, shape index: {}]   ;;  %s2593_s3 = inlined_call_operand.hbm [shape: f32[2,8,8,128], index: 3, kind: output, shape index: {}]  }
   0x1   :  { %10 = vsyncpa [#allocation5 + $0x1], 0 }
   0x2   :  { %11 = vsyncpa [#allocation8], 0 }
   0x3   :  { %12 = vsyncpa [#allocation6], 0 }
   0x4   :  { %14 = vsyncpa [#allocation6 + $0x1], 0  ;;  %s2140_s12 = smov 0   ;;  %s2142_s13 = smov 0  }
   0x5   :  { %s2144_s14 = smov 0   ;;  %s2146_s15 = smov 0  }
   0x6 LB: > { %s2161_s16 = sadd.s32 4294967295, %s2071_s15   ;;  %s1440_s17 = sadd.s32 4294967294, %s2071_s15   ;;  %s2071_s15 = sphi %s2146_s15, %s2621_s15   ;;  %s2067_s14 = sphi %s2144_s14, %s2620_s14   ;;  %s2063_s13 = sphi %s2142_s13, %s2619_s13   ;;  %s2059_s12 = sphi %s2140_s12, %s2618_s12  }
   0x7   : > { %p40_p0 = scmp.ne.s32.totalorder %s2063_s13, %s2059_s12  ;;  %p2594_p1 = scmp.eq.s32.totalorder %s2161_s16, 0 }
   0x8   : > { %p112_p3 = scmp.eq.s32.totalorder %s1440_s17, 1  ;;  %p1441_p5 = scmp.ge.s32.totalorder %s2071_s15, 1 }
   0x9   : > { %p2170_p4 = por %p2594_p1, %p40_p0  ;;  %p119_p7 = scmp.lt.s32.totalorder %s2071_s15, 3 }
   0xa   : > { %p2175_p6 = por %p112_p3, %p40_p0  ;;  %s2109_s21 = smov [#allocation7]  }
   0xb   : > { %s2597_s18 = scalar_select %p2170_p4, 1, 0 }
   0xc   : > { %s2598_s19 = scalar_select %p2175_p6, 1, 0 }
   0xd   : > { %p2180_p8 = pnand %p1441_p5, %p119_p7  ;;  %s131_s22 = sshll.u32 %s2109_s21, 4  ;;  %s2184_s22 = int_to_ptr.vmem [resolvable:$true] %s131_s22 }
   0xe   : > { %s2110_s24 = smov [#allocation9]   ;;  %s1879_s28 = scalar_lea.hbm %s2591_s1, 50176 }
   0xf   : > { %p1689_p9 = pneg %p2180_p8  ;;  %s145_s25 = sshll.u32 %s2110_s24, 4  ;;  %s2195_s25 = int_to_ptr.vmem [resolvable:$true] %s145_s25 }
  0x10   : > { %p1880_p12 = scmp.ne.s32.totalorder %s2591_s1, %s1879_s28  ;;  %p1886_p5 = scmp.lt.u32.totalorder %s1879_s28, %s2591_s1 }
  0x11   : > { %p2191_p11 = pnand %p1689_p9, %p2594_p1 }
  0x13   : > { %p1881_p13 = pneg %p2191_p11 }
  0x15   : > { %p1882_p0 = pnand %p1881_p13, %p1880_p12 }
  0x17   : > { %p1883_p3 = pneg %p1882_p0 }
  0x19   : > { %p1888_p7 = pnand %p1886_p5, %p1883_p3 }
  0x1b   : > { %1891 = shalt.err (!%p1888_p7)
}
  0x1c   : > { %s1892_s6 = scalar_lea.vmem %s2184_s22, 50176  ;;  %p1900_p2 = scmp.lt.s32.totalorder %s2184_s22, %s2184_s22 }
  0x1d   : > { %p1893_p9 = scmp.ne.s32.totalorder %s2184_s22, %s1892_s6  ;;  %p1901_p12 = scmp.lt.s32.totalorder %s1892_s6, %s1892_s6 }
  0x1f   : > { %p1895_p10 = pnand %p1893_p9, %p1881_p13  ;;  %p1902_p0 = por %p1901_p12, %p1900_p2 }
  0x21   : > { %p1896_p1 = pneg %p1895_p10 }
  0x23   : > { %p1903_p6 = pnand %p1902_p0, %p1896_p1 }
  0x25   : > { %1906 = shalt.err (!%p1903_p6)
}
  0x26   : > { %s2111_s7 = smov 64   ;;  %s2112_s8 = smov 4  }
  0x27   : > { %1692 = dma.hbm_to_vmem [thread:$0]  (!%p2191_p11), %s2591_s1, 50176, %s2184_s22, [#allocation8], %s2111_s7, %s2111_s7, %s2112_s8  }
  0x28   : > { %s1907_s21 = scalar_lea.hbm %s2592_s2, 16 }
  0x29   : > { %p1908_p2 = scmp.ne.s32.totalorder %s2592_s2, %s1907_s21  ;;  %p1914_p10 = scmp.lt.u32.totalorder %s1907_s21, %s2592_s2 }
  0x2b   : > { %p1910_p1 = pnand %p1908_p2, %p1881_p13 }
  0x2d   : > { %p1911_p6 = pneg %p1910_p1 }
  0x2f   : > { %p1916_p3 = pnand %p1914_p10, %p1911_p6 }
  0x31   : > { %1919 = shalt.err (!%p1916_p3)
}
  0x32   : > { %s1920_s22 = scalar_lea.vmem %s2195_s25, 16  ;;  %s1927_s29 = scalar_lea.vmem %s2195_s25, 32 }
  0x33   : > { %p1921_p5 = scmp.ne.s32.totalorder %s2195_s25, %s1920_s22  ;;  %p1928_p12 = scmp.lt.s32.totalorder %s2195_s25, %s2195_s25 }
  0x34   : > { %p1929_p0 = scmp.lt.s32.totalorder %s1927_s29, %s1920_s22 }
  0x35   : > { %p1923_p7 = pnand %p1921_p5, %p1881_p13 }
  0x36   : > { %p1930_p2 = por %p1929_p0, %p1928_p12 }
  0x37   : > { %p1924_p9 = pneg %p1923_p7 }
  0x39   : > { %p1931_p1 = pnand %p1930_p2, %p1924_p9 }
  0x3b   : > { %1934 = shalt.err (!%p1931_p1)
}
  0x3c   : > { %1695 = dma.hbm_to_vmem [thread:$0]  (!%p2191_p11), %s2592_s2, 16, %s2195_s25, [#allocation8]  }
  0x3d   : > { %s2251_s5 = sadd.s32 1, %s2071_s15   ;;  %s27_s23 = sadd.s32 1, %s2067_s14 }
  0x3e   : > { %s24_s6 = ssub.s32 %s2071_s15, %s2251_s5  ;;  %p34_p13 = scmp.ne.s32.totalorder %s2067_s14, %s2063_s13 }
  0x3f   : > { %p25_p6 = scmp.eq.s32.totalorder %s24_s6, 0  ;;  %p35_p10 = scmp.eq.s32.totalorder %s2071_s15, 0 }
  0x40   : > { %p2601_p3 = scmp.eq.s32.totalorder %s2161_s16, 1  ;;  %p1706_p7 = scmp.lt.s32.totalorder %s2071_s15, 2 }
  0x41   : > { %s2267_s8 = scalar_select %p25_p6, %s2067_s14, %s27_s23  }
  0x42   : > { %p2261_p5 = por %p2601_p3, %p34_p13  ;;  %p36_p9 = por %p35_p10, %p34_p13 }
  0x43   : > { %s156_s9 = sand.u32 1, %s2067_s14   ;;  %s1517_s25 = sshll.u32 %s2071_s15, 10 }
  0x44   : > { %s2602_s7 = scalar_select %p2261_p5, 1, 0 }
  0x45   : > { %s1445_s10 = sshll.u32 %s156_s9, 6  ;;  %s2274_s21 = scalar_lea.hbm %s2590_s0, %s1517_s25 }
  0x46   : > { %s160_s24 = scalar_lea.vmem [#allocation4], %s1445_s10  ;;  %p2278_p11 = pnand %p1706_p7, %p36_p9 }
  0x47   : > { %s167_s26 = sshll.u32 %s160_s24, 4  ;;  %s2282_s28 = scalar_lea.sflag [#allocation5], %s156_s9  ;;  %s2276_s26 = int_to_ptr.vmem [resolvable:$true] %s167_s26 }
  0x48   : > { %s1935_s22 = scalar_lea.hbm %s2274_s21, 1024  ;;  %p1937_p0 = pneg %p2278_p11 }
  0x49   : > { %p1936_p12 = scmp.ne.s32.totalorder %s2274_s21, %s1935_s22  ;;  %s1940_s4 = scalar_lea.hbm %s2590_s0, 2048 }
  0x4a   : > { %p1941_p13 = scmp.lt.u32.totalorder %s2274_s21, %s2590_s0  ;;  %p1942_p6 = scmp.lt.u32.totalorder %s1940_s4, %s1935_s22 }
  0x4b   : > { %p1938_p2 = pnand %p1937_p0, %p1936_p12  ;;  %p1944_p3 = scmp.lt.u32.totalorder %s1935_s22, %s2274_s21 }
  0x4c   : > { %p1943_p10 = por %p1942_p6, %p1941_p13 }
  0x4d   : > { %p1939_p1 = pneg %p1938_p2 }
  0x4e   : > { %p1945_p7 = por %p1944_p3, %p1943_p10 }
  0x50   : > { %p1946_p9 = pnand %p1945_p7, %p1939_p1 }
  0x52   : > { %1949 = shalt.err (!%p1946_p9)
}
  0x53   : > { %s1950_s9 = scalar_lea.vmem %s2276_s26, 1024  ;;  %s2113_s10 = smov [#allocation4]  }
  0x54   : > { %p1951_p12 = scmp.ne.s32.totalorder %s2276_s26, %s1950_s9  ;;  %s1955_s25 = sshll.u32 %s2113_s10, 4  ;;  %s1956_s25 = int_to_ptr.vmem [resolvable:$false] %s1955_s25 }
  0x55   : > { %s1957_s11 = scalar_lea.vmem %s1956_s25, 2048  ;;  %p1958_p4 = scmp.lt.s32.totalorder %s2276_s26, %s1956_s25 }
  0x56   : > { %p1953_p2 = pnand %p1951_p12, %p1937_p0  ;;  %p1959_p13 = scmp.lt.s32.totalorder %s1957_s11, %s1950_s9 }
  0x58   : > { %p1954_p5 = pneg %p1953_p2  ;;  %p1960_p6 = por %p1959_p13, %p1958_p4 }
  0x5a   : > { %p1961_p10 = pnand %p1960_p6, %p1954_p5 }
  0x5c   : > { %1964 = shalt.err (!%p1961_p10)
}
  0x5d   : > { %s2114_s17 = smov 128   ;;  %s2115_s24 = smov 8  }
  0x5e   : > { %1699 = dma.hbm_to_vmem [thread:$0]  (!%p2278_p11), %s2274_s21, 1024, %s2276_s26, %s2282_s28, %s2114_s17, %s2114_s17, %s2115_s24  }
  0x5f   : > { %179 = sbr.rel (%p2180_p8) target bundleno = 509 (0x1fd), region = 32  ;;  %s2313_s22 = sand.u32 (!%p2180_p8), 1, %s2063_s13  }
  0x60   : > { %s1449_s29 = sshll.u32 (!%p2180_p8), %s2313_s22, 6  ;;  %s182_s30 = scalar_lea.sflag (!%p2180_p8), [#allocation5], %s2313_s22 }
  0x61   : > { %s2319_s4 = scalar_lea.vmem (!%p2180_p8), [#allocation4], %s1449_s29  ;;  %p2604_p4 = scmp.ne.s32.totalorder (!%p2180_p8), %s2597_s18, 0 }
  0x66   : > { %2046 = dma.done.wait (%p2604_p4), %s182_s30, 1024  }
  0x67   : > { %2048 = vsyncadd (%p2604_p4), %s182_s30, 4294966272  ;;  %p2605_p5 = scmp.eq.s32.totalorder %s2161_s16, 0 }
  0x69   : > { %2050 = dma.done.wait (%p2605_p5), [#allocation8], 50192   ;;  %p2606_p8 = pmov %p2605_p5 }
  0x6a   : > { %v2116_v0 = vmov 0.0   ;;  %v245_v1 = vld [vmem:[%s2319_s4] sm:$0xff]  ;;  %v246_v2 = vld [vmem:[%s2319_s4 + $0x8] sm:$0xff]  ;;  %v247_v3 = vld [vmem:[%s2319_s4 + $0x10] sm:$0xff]  ;;  %s2339_s18 = scalar_lea.vmem [#allocation10], %s1449_s29  ;;  %s2357_s20 = smov 0  }
  0x6b   : > { %2052 = vsyncadd (%p2606_p8), [#allocation8], 4294917104  ;;  %223 = vst [vmem:[#allocation2 + $0x30] sm:$0xff] %v2116_v0  ;;  %v248_v4 = vld [vmem:[%s2319_s4 + $0x18] sm:$0xff]  ;;  %v249_v5 = vld [vmem:[%s2319_s4 + $0x20] sm:$0xff] }
  0x6c   : > { %217 = vst [vmem:[#allocation2] sm:$0xff] %v2116_v0  ;;  %218 = vst [vmem:[#allocation2 + $0x8] sm:$0xff] %v2116_v0  ;;  %v250_v6 = vld [vmem:[%s2319_s4 + $0x28] sm:$0xff]  ;;  %v251_v7 = vld [vmem:[%s2319_s4 + $0x30] sm:$0xff] }
  0x6d   : > { %219 = vst [vmem:[#allocation2 + $0x10] sm:$0xff] %v2116_v0  ;;  %220 = vst [vmem:[#allocation2 + $0x18] sm:$0xff] %v2116_v0  ;;  %v252_v8 = vld [vmem:[%s2319_s4 + $0x38] sm:$0xff] }
  0x6e   : > { %221 = vst [vmem:[#allocation2 + $0x20] sm:$0xff] %v2116_v0  ;;  %222 = vst [vmem:[#allocation2 + $0x28] sm:$0xff] %v2116_v0 }
  0x6f   : > { %224 = vst [vmem:[#allocation2 + $0x38] sm:$0xff] %v2116_v0  ;;  %225 = vst [vmem:[#allocation2 + $0x40] sm:$0xff] %v2116_v0 }
  0x70   : > { %226 = vst [vmem:[#allocation2 + $0x48] sm:$0xff] %v2116_v0  ;;  %227 = vst [vmem:[#allocation2 + $0x50] sm:$0xff] %v2116_v0 }
  0x71   : > { %228 = vst [vmem:[#allocation2 + $0x58] sm:$0xff] %v2116_v0  ;;  %229 = vst [vmem:[#allocation2 + $0x60] sm:$0xff] %v2116_v0 }
  0x72   : > { %230 = vst [vmem:[#allocation2 + $0x68] sm:$0xff] %v2116_v0  ;;  %231 = vst [vmem:[#allocation2 + $0x70] sm:$0xff] %v2116_v0 }
  0x73   : > { %232 = vst [vmem:[#allocation2 + $0x78] sm:$0xff] %v2116_v0  ;;  %233 = vst [vmem:[#allocation2 + $0x80] sm:$0xff] %v2116_v0  ;;  %v290_v9 = vld [vmem:[#allocation2 + $0x1] sm:$0xff] }
  0x74   : > { %234 = vst [vmem:[#allocation2 + $0x88] sm:$0xff] %v2116_v0  ;;  %235 = vst [vmem:[#allocation2 + $0x90] sm:$0xff] %v2116_v0  ;;  %v291_v10 = vld [vmem:[#allocation2 + $0x11] sm:$0xff]  ;;  %v318_v15 = vld [vmem:[#allocation2 + $0x2] sm:$0xff] }
  0x75   : > { %236 = vst [vmem:[#allocation2 + $0x98] sm:$0xff] %v2116_v0  ;;  %237 = vst [vmem:[#allocation2 + $0xa0] sm:$0xff] %v2116_v0  ;;  %v292_v11 = vld [vmem:[#allocation2 + $0x21] sm:$0xff]  ;;  %v319_v16 = vld [vmem:[#allocation2 + $0x12] sm:$0xff] }
  0x76   : > { %238 = vst [vmem:[#allocation2 + $0xa8] sm:$0xff] %v2116_v0  ;;  %239 = vst [vmem:[#allocation2 + $0xb0] sm:$0xff] %v2116_v0  ;;  %v320_v17 = vld [vmem:[#allocation2 + $0x22] sm:$0xff]  ;;  %v347_v22 = vld [vmem:[#allocation2 + $0x13] sm:$0xff] }
  0x77   : > { %240 = vst [vmem:[#allocation2 + $0xb8] sm:$0xff] %v2116_v0  ;;  %241 = vst [vmem:[#allocation2 + $0xc0] sm:$0xff] %v2116_v0  ;;  %v346_v21 = vld [vmem:[#allocation2 + $0x3] sm:$0xff]  ;;  %v375_v52 = vld [vmem:[#allocation2 + $0x14] sm:$0xff] }
  0x78   : > { %242 = vst [vmem:[#allocation2 + $0xc8] sm:$0xff] %v2116_v0  ;;  %243 = vst [vmem:[#allocation2 + $0xd0] sm:$0xff] %v2116_v0  ;;  %v348_v23 = vld [vmem:[#allocation2 + $0x23] sm:$0xff] }
  0x79   : > { %244 = vst [vmem:[#allocation2 + $0xd8] sm:$0xff] %v2116_v0  ;;  %276 = vst [vmem:[#allocation3] sm:$0xff] %v2116_v0  ;;  %v374_v51 = vld [vmem:[#allocation2 + $0x4] sm:$0xff] }
  0x7a   : > { %277 = vst [vmem:[#allocation3 + $0x38] sm:$0xff] %v2116_v0  ;;  %278 = vst [vmem:[#allocation3 + $0x70] sm:$0xff] %v2116_v0  ;;  %v376_v53 = vld [vmem:[#allocation2 + $0x24] sm:$0xff] }
  0x7b   : > { %287 = vst [vmem:[#allocation3 + $0x268] sm:$0xff] %v2116_v0  ;;  %288 = vst [vmem:[#allocation3 + $0x2a0] sm:$0xff] %v2116_v0 }
  0x7c   : > { %289 = vst [vmem:[#allocation3 + $0x2d8] sm:$0xff] %v2116_v0  ;;  %254 = vst [vmem:[#allocation2 + $0x33] sm:$0xff] %v245_v1 }
  0x7d   : > { %255 = vst [vmem:[#allocation2 + $0x43] sm:$0xff] %v246_v2  ;;  %256 = vst [vmem:[#allocation2 + $0x53] sm:$0xff] %v247_v3 }
  0x7e   : > { %363 = vst [vmem:[#allocation3 + $0xc0] sm:$0xff] %v245_v1  ;;  %364 = vst [vmem:[#allocation3 + $0xf8] sm:$0xff] %v246_v2  ;;  %v301_v12 = vld [vmem:[#allocation2 + $0xb1] sm:$0xff]  ;;  %v402_v1 = vld [vmem:[#allocation2 + $0x5] sm:$0xff] }
  0x7f   : > { %365 = vst [vmem:[#allocation3 + $0x130] sm:$0xff] %v247_v3  ;;  %257 = vst [vmem:[#allocation2 + $0x63] sm:$0xff] %v248_v4  ;;  %v302_v13 = vld [vmem:[#allocation2 + $0xc1] sm:$0xff]  ;;  %v329_v18 = vld [vmem:[#allocation2 + $0xb2] sm:$0xff] }
  0x80   : > { %258 = vst [vmem:[#allocation2 + $0x73] sm:$0xff] %v249_v5  ;;  %259 = vst [vmem:[#allocation2 + $0x83] sm:$0xff] %v250_v6  ;;  %v303_v14 = vld [vmem:[#allocation2 + $0xd1] sm:$0xff]  ;;  %v330_v19 = vld [vmem:[#allocation2 + $0xc2] sm:$0xff] }
  0x81   : > { %366 = vst [vmem:[#allocation3 + $0x168] sm:$0xff] %v248_v4  ;;  %367 = vst [vmem:[#allocation3 + $0x1a0] sm:$0xff] %v249_v5  ;;  %v331_v20 = vld [vmem:[#allocation2 + $0xd2] sm:$0xff]  ;;  %v358_v49 = vld [vmem:[#allocation2 + $0xc3] sm:$0xff] }
  0x82   : > { %368 = vst [vmem:[#allocation3 + $0x1d8] sm:$0xff] %v250_v6  ;;  %260 = vst [vmem:[#allocation2 + $0x93] sm:$0xff] %v251_v7  ;;  %v357_v24 = vld [vmem:[#allocation2 + $0xb3] sm:$0xff]  ;;  %v386_v63 = vld [vmem:[#allocation2 + $0xc4] sm:$0xff] }
  0x83   : > { %261 = vst [vmem:[#allocation2 + $0xa3] sm:$0xff] %v252_v8  ;;  %304 = vst [vmem:[#allocation3 + $0x8] sm:$0xff] %v290_v9  ;;  %v265_v25 = vld [vmem:[#allocation2 + $0x30] sm:$0xff]  ;;  %v404_v3 = vld [vmem:[#allocation2 + $0x25] sm:$0xff] }
  0x84   : > { %369 = vst [vmem:[#allocation3 + $0x210] sm:$0xff] %v251_v7  ;;  %370 = vst [vmem:[#allocation3 + $0x248] sm:$0xff] %v252_v8  ;;  %v266_v26 = vld [vmem:[#allocation2 + $0x40] sm:$0xff]  ;;  %v267_v27 = vld [vmem:[#allocation2 + $0x50] sm:$0xff] }
  0x85   : > { %305 = vst [vmem:[#allocation3 + $0x40] sm:$0xff] %v291_v10  ;;  %306 = vst [vmem:[#allocation3 + $0x78] sm:$0xff] %v292_v11  ;;  %v293_v33 = vld [vmem:[#allocation2 + $0x31] sm:$0xff]  ;;  %v294_v34 = vld [vmem:[#allocation2 + $0x41] sm:$0xff] }
  0x86   : > { %315 = vst [vmem:[#allocation3 + $0x270] sm:$0xff] %v301_v12  ;;  %316 = vst [vmem:[#allocation3 + $0x2a8] sm:$0xff] %v302_v13  ;;  %v268_v28 = vld [vmem:[#allocation2 + $0x60] sm:$0xff]  ;;  %v295_v35 = vld [vmem:[#allocation2 + $0x51] sm:$0xff] }
  0x87   : > { %317 = vst [vmem:[#allocation3 + $0x2e0] sm:$0xff] %v303_v14  ;;  %332 = vst [vmem:[#allocation3 + $0x10] sm:$0xff] %v318_v15  ;;  %v269_v29 = vld [vmem:[#allocation2 + $0x70] sm:$0xff]  ;;  %v270_v30 = vld [vmem:[#allocation2 + $0x80] sm:$0xff] }
  0x88   : > { %333 = vst [vmem:[#allocation3 + $0x48] sm:$0xff] %v319_v16  ;;  %334 = vst [vmem:[#allocation3 + $0x80] sm:$0xff] %v320_v17  ;;  %v296_v36 = vld [vmem:[#allocation2 + $0x61] sm:$0xff]  ;;  %v297_v37 = vld [vmem:[#allocation2 + $0x71] sm:$0xff] }
  0x89   : > { %343 = vst [vmem:[#allocation3 + $0x278] sm:$0xff] %v329_v18  ;;  %344 = vst [vmem:[#allocation3 + $0x2b0] sm:$0xff] %v330_v19  ;;  %v271_v31 = vld [vmem:[#allocation2 + $0x90] sm:$0xff]  ;;  %v298_v38 = vld [vmem:[#allocation2 + $0x81] sm:$0xff] }
  0x8a   : > { %345 = vst [vmem:[#allocation3 + $0x2e8] sm:$0xff] %v331_v20  ;;  %360 = vst [vmem:[#allocation3 + $0x18] sm:$0xff] %v346_v21  ;;  %v272_v32 = vld [vmem:[#allocation2 + $0xa0] sm:$0xff]  ;;  %v299_v39 = vld [vmem:[#allocation2 + $0x91] sm:$0xff] }
  0x8b   : > { %361 = vst [vmem:[#allocation3 + $0x50] sm:$0xff] %v347_v22  ;;  %362 = vst [vmem:[#allocation3 + $0x88] sm:$0xff] %v348_v23  ;;  %v300_v40 = vld [vmem:[#allocation2 + $0xa1] sm:$0xff]  ;;  %v321_v41 = vld [vmem:[#allocation2 + $0x32] sm:$0xff] }
  0x8c   : > { %371 = vst [vmem:[#allocation3 + $0x280] sm:$0xff] %v357_v24  ;;  %279 = vst [vmem:[#allocation3 + $0xa8] sm:$0xff] %v265_v25  ;;  %v322_v42 = vld [vmem:[#allocation2 + $0x42] sm:$0xff]  ;;  %v323_v43 = vld [vmem:[#allocation2 + $0x52] sm:$0xff] }
  0x8d   : > { %280 = vst [vmem:[#allocation3 + $0xe0] sm:$0xff] %v266_v26  ;;  %281 = vst [vmem:[#allocation3 + $0x118] sm:$0xff] %v267_v27  ;;  %v324_v44 = vld [vmem:[#allocation2 + $0x62] sm:$0xff]  ;;  %v325_v45 = vld [vmem:[#allocation2 + $0x72] sm:$0xff] }
  0x8e   : > { %282 = vst [vmem:[#allocation3 + $0x150] sm:$0xff] %v268_v28  ;;  %283 = vst [vmem:[#allocation3 + $0x188] sm:$0xff] %v269_v29  ;;  %v326_v46 = vld [vmem:[#allocation2 + $0x82] sm:$0xff]  ;;  %v327_v47 = vld [vmem:[#allocation2 + $0x92] sm:$0xff]  ;;  %v2341_v29 = vmov 0.0  }
  0x8f   : > { %284 = vst [vmem:[#allocation3 + $0x1c0] sm:$0xff] %v270_v30  ;;  %285 = vst [vmem:[#allocation3 + $0x1f8] sm:$0xff] %v271_v31  ;;  %v328_v48 = vld [vmem:[#allocation2 + $0xa2] sm:$0xff]  ;;  %v359_v50 = vld [vmem:[#allocation2 + $0xd3] sm:$0xff]  ;;  %v2343_v30 = vmov 0.0   ;;  %v2345_v31 = vmov 0.0  }
  0x90   : > { %286 = vst [vmem:[#allocation3 + $0x230] sm:$0xff] %v272_v32  ;;  %307 = vst [vmem:[#allocation3 + $0xb0] sm:$0xff] %v293_v33  ;;  %v377_v54 = vld [vmem:[#allocation2 + $0x34] sm:$0xff]  ;;  %v378_v55 = vld [vmem:[#allocation2 + $0x44] sm:$0xff]  ;;  %v2347_v32 = vmov 0.0   ;;  %v2349_v33 = vmov 0.0  }
  0x91   : > { %308 = vst [vmem:[#allocation3 + $0xe8] sm:$0xff] %v294_v34  ;;  %309 = vst [vmem:[#allocation3 + $0x120] sm:$0xff] %v295_v35  ;;  %v379_v56 = vld [vmem:[#allocation2 + $0x54] sm:$0xff]  ;;  %v380_v57 = vld [vmem:[#allocation2 + $0x64] sm:$0xff]  ;;  %v2351_v34 = vmov 0.0   ;;  %v2353_v35 = vmov 0.0  }
  0x92   : > { %310 = vst [vmem:[#allocation3 + $0x158] sm:$0xff] %v296_v36  ;;  %311 = vst [vmem:[#allocation3 + $0x190] sm:$0xff] %v297_v37  ;;  %v381_v58 = vld [vmem:[#allocation2 + $0x74] sm:$0xff]  ;;  %v382_v59 = vld [vmem:[#allocation2 + $0x84] sm:$0xff]  ;;  %v2355_v36 = vmov 0.0  }
  0x93   : > { %312 = vst [vmem:[#allocation3 + $0x1c8] sm:$0xff] %v298_v38  ;;  %313 = vst [vmem:[#allocation3 + $0x200] sm:$0xff] %v299_v39  ;;  %v383_v60 = vld [vmem:[#allocation2 + $0x94] sm:$0xff]  ;;  %v384_v61 = vld [vmem:[#allocation2 + $0xa4] sm:$0xff] }
  0x94   : > { %314 = vst [vmem:[#allocation3 + $0x238] sm:$0xff] %v300_v40  ;;  %335 = vst [vmem:[#allocation3 + $0xb8] sm:$0xff] %v321_v41  ;;  %v385_v62 = vld [vmem:[#allocation2 + $0xb4] sm:$0xff]  ;;  %v406_v5 = vld [vmem:[#allocation2 + $0x45] sm:$0xff] }
  0x95   : > { %336 = vst [vmem:[#allocation3 + $0xf0] sm:$0xff] %v322_v42  ;;  %337 = vst [vmem:[#allocation3 + $0x128] sm:$0xff] %v323_v43  ;;  %v387_v0 = vld [vmem:[#allocation2 + $0xd4] sm:$0xff]  ;;  %v408_v7 = vld [vmem:[#allocation2 + $0x65] sm:$0xff] }
  0x96   : > { %338 = vst [vmem:[#allocation3 + $0x160] sm:$0xff] %v324_v44  ;;  %339 = vst [vmem:[#allocation3 + $0x198] sm:$0xff] %v325_v45  ;;  %v403_v2 = vld [vmem:[#allocation2 + $0x15] sm:$0xff]  ;;  %v410_v9 = vld [vmem:[#allocation2 + $0x85] sm:$0xff] }
  0x97   : > { %340 = vst [vmem:[#allocation3 + $0x1d0] sm:$0xff] %v326_v46  ;;  %341 = vst [vmem:[#allocation3 + $0x208] sm:$0xff] %v327_v47  ;;  %v405_v4 = vld [vmem:[#allocation2 + $0x35] sm:$0xff]  ;;  %v412_v11 = vld [vmem:[#allocation2 + $0xa5] sm:$0xff] }
  0x98   : > { %342 = vst [vmem:[#allocation3 + $0x240] sm:$0xff] %v328_v48  ;;  %372 = vst [vmem:[#allocation3 + $0x2b8] sm:$0xff] %v358_v49  ;;  %v407_v6 = vld [vmem:[#allocation2 + $0x55] sm:$0xff]  ;;  %v414_v13 = vld [vmem:[#allocation2 + $0xc5] sm:$0xff] }
  0x99   : > { %373 = vst [vmem:[#allocation3 + $0x2f0] sm:$0xff] %v359_v50  ;;  %388 = vst [vmem:[#allocation3 + $0x20] sm:$0xff] %v374_v51  ;;  %v409_v8 = vld [vmem:[#allocation2 + $0x75] sm:$0xff]  ;;  %v430_v15 = vld [vmem:[#allocation2 + $0x6] sm:$0xff] }
  0x9a   : > { %389 = vst [vmem:[#allocation3 + $0x58] sm:$0xff] %v375_v52  ;;  %390 = vst [vmem:[#allocation3 + $0x90] sm:$0xff] %v376_v53  ;;  %v411_v10 = vld [vmem:[#allocation2 + $0x95] sm:$0xff]  ;;  %v432_v17 = vld [vmem:[#allocation2 + $0x26] sm:$0xff] }
  0x9b   : > { %391 = vst [vmem:[#allocation3 + $0xc8] sm:$0xff] %v377_v54  ;;  %392 = vst [vmem:[#allocation3 + $0x100] sm:$0xff] %v378_v55  ;;  %v413_v12 = vld [vmem:[#allocation2 + $0xb5] sm:$0xff]  ;;  %v434_v19 = vld [vmem:[#allocation2 + $0x46] sm:$0xff] }
  0x9c   : > { %393 = vst [vmem:[#allocation3 + $0x138] sm:$0xff] %v379_v56  ;;  %394 = vst [vmem:[#allocation3 + $0x170] sm:$0xff] %v380_v57  ;;  %v415_v14 = vld [vmem:[#allocation2 + $0xd5] sm:$0xff]  ;;  %v436_v21 = vld [vmem:[#allocation2 + $0x66] sm:$0xff] }
  0x9d   : > { %395 = vst [vmem:[#allocation3 + $0x1a8] sm:$0xff] %v381_v58  ;;  %396 = vst [vmem:[#allocation3 + $0x1e0] sm:$0xff] %v382_v59  ;;  %v431_v16 = vld [vmem:[#allocation2 + $0x16] sm:$0xff]  ;;  %v438_v23 = vld [vmem:[#allocation2 + $0x86] sm:$0xff] }
  0x9e   : > { %397 = vst [vmem:[#allocation3 + $0x218] sm:$0xff] %v383_v60  ;;  %398 = vst [vmem:[#allocation3 + $0x250] sm:$0xff] %v384_v61  ;;  %v433_v18 = vld [vmem:[#allocation2 + $0x36] sm:$0xff]  ;;  %v440_v25 = vld [vmem:[#allocation2 + $0xa6] sm:$0xff] }
  0x9f   : > { %399 = vst [vmem:[#allocation3 + $0x288] sm:$0xff] %v385_v62  ;;  %400 = vst [vmem:[#allocation3 + $0x2c0] sm:$0xff] %v386_v63  ;;  %v435_v20 = vld [vmem:[#allocation2 + $0x56] sm:$0xff]  ;;  %v442_v27 = vld [vmem:[#allocation2 + $0xc6] sm:$0xff] }
  0xa0   : > { %401 = vst [vmem:[#allocation3 + $0x2f8] sm:$0xff] %v387_v0  ;;  %416 = vst [vmem:[#allocation3 + $0x28] sm:$0xff] %v402_v1  ;;  %v437_v22 = vld [vmem:[#allocation2 + $0x76] sm:$0xff] }
  0xa1   : > { %417 = vst [vmem:[#allocation3 + $0x60] sm:$0xff] %v403_v2  ;;  %418 = vst [vmem:[#allocation3 + $0x98] sm:$0xff] %v404_v3  ;;  %v439_v24 = vld [vmem:[#allocation2 + $0x96] sm:$0xff] }
  0xa2   : > { %419 = vst [vmem:[#allocation3 + $0xd0] sm:$0xff] %v405_v4  ;;  %420 = vst [vmem:[#allocation3 + $0x108] sm:$0xff] %v406_v5  ;;  %v441_v26 = vld [vmem:[#allocation2 + $0xb6] sm:$0xff] }
  0xa3   : > { %421 = vst [vmem:[#allocation3 + $0x140] sm:$0xff] %v407_v6  ;;  %422 = vst [vmem:[#allocation3 + $0x178] sm:$0xff] %v408_v7  ;;  %v443_v28 = vld [vmem:[#allocation2 + $0xd6] sm:$0xff] }
  0xa4   : > { %423 = vst [vmem:[#allocation3 + $0x1b0] sm:$0xff] %v409_v8  ;;  %424 = vst [vmem:[#allocation3 + $0x1e8] sm:$0xff] %v410_v9 }
  0xa5   : > { %425 = vst [vmem:[#allocation3 + $0x220] sm:$0xff] %v411_v10  ;;  %426 = vst [vmem:[#allocation3 + $0x258] sm:$0xff] %v412_v11 }
  0xa6   : > { %427 = vst [vmem:[#allocation3 + $0x290] sm:$0xff] %v413_v12  ;;  %428 = vst [vmem:[#allocation3 + $0x2c8] sm:$0xff] %v414_v13 }
  0xa7   : > { %429 = vst [vmem:[#allocation3 + $0x300] sm:$0xff] %v415_v14  ;;  %444 = vst [vmem:[#allocation3 + $0x30] sm:$0xff] %v430_v15 }
  0xa8   : > { %445 = vst [vmem:[#allocation3 + $0x68] sm:$0xff] %v431_v16  ;;  %446 = vst [vmem:[#allocation3 + $0xa0] sm:$0xff] %v432_v17 }
  0xa9   : > { %447 = vst [vmem:[#allocation3 + $0xd8] sm:$0xff] %v433_v18  ;;  %448 = vst [vmem:[#allocation3 + $0x110] sm:$0xff] %v434_v19 }
  0xaa   : > { %449 = vst [vmem:[#allocation3 + $0x148] sm:$0xff] %v435_v20  ;;  %450 = vst [vmem:[#allocation3 + $0x180] sm:$0xff] %v436_v21 }
  0xab   : > { %451 = vst [vmem:[#allocation3 + $0x1b8] sm:$0xff] %v437_v22  ;;  %452 = vst [vmem:[#allocation3 + $0x1f0] sm:$0xff] %v438_v23 }
  0xac   : > { %453 = vst [vmem:[#allocation3 + $0x228] sm:$0xff] %v439_v24  ;;  %454 = vst [vmem:[#allocation3 + $0x260] sm:$0xff] %v440_v25 }
  0xad   : > { %455 = vst [vmem:[#allocation3 + $0x298] sm:$0xff] %v441_v26  ;;  %456 = vst [vmem:[#allocation3 + $0x2d0] sm:$0xff] %v442_v27 }
  0xae   : > { %457 = vst [vmem:[#allocation3 + $0x308] sm:$0xff] %v443_v28 }
  0xaf LB: >> { %s1519_s21 = smul.u32 448, %s2107_s20  ;;  %s2107_s20 = sphi %s2357_s20, %s463_s20   ;;  %v2103_v36 = vphi %v2355_v36, %v2614_v36   ;;  %v2099_v35 = vphi %v2353_v35, %v2613_v35   ;;  %v2095_v34 = vphi %v2351_v34, %v2612_v34   ;;  %v2091_v33 = vphi %v2349_v33, %v2611_v33   ;;  %v2087_v32 = vphi %v2347_v32, %v2610_v32   ;;  %v2083_v31 = vphi %v2345_v31, %v2609_v31   ;;  %v2079_v30 = vphi %v2343_v30, %v2608_v30   ;;  %v2075_v29 = vphi %v2341_v29, %v2607_v29  }
  0xb0   : >> { %s1518_s27 = smul.u32 56, %s2107_s20  ;;  %s463_s20 = sadd.s32 1, %s2107_s20  }
  0xb1   : >> { %s2387_s26 = scalar_lea.vmem [#allocation7], %s1519_s21  ;;  %p460_p11 = scmp.ge.s32.totalorder %s463_s20, 7  }
  0xb2   : >> { %v1823_v37 = vld [vmem:[%s2387_s26 + $0x40] sm:$0xff]   ;;  %v1827_v41 = vld [vmem:[%s2387_s26 + $0x48] sm:$0xff]   ;;  %v1831_v45 = vld [vmem:[%s2387_s26 + $0x50] sm:$0xff]   ;;  %s2422_s28 = scalar_lea.vmem [#allocation3], %s1518_s27  ;;  %s1520_s23 = sshll.u32 (%p460_p11), %s2161_s16, 10 }
  0xb3   : >> { %v1824_v38 = vld [vmem:[%s2387_s26 + $0xc0] sm:$0xff]   ;;  %1521 = vmatprep.subr.bf16.mxu0 %v1823_v37  ;;  %v1828_v42 = vld [vmem:[%s2387_s26 + $0xc8] sm:$0xff]   ;;  %v1832_v46 = vld [vmem:[%s2387_s26 + $0xd0] sm:$0xff]   ;;  %s2535_s10 = scalar_lea.hbm (%p460_p11), %s2593_s3, %s1520_s23  ;;  %s1315_s25 = sshll.u32 (%p460_p11), %s2339_s18, 4  ;;  %s2538_s25 = int_to_ptr.vmem [resolvable:$true] %s1315_s25 }
  0xb4   : >> { %v1825_v39 = vld [vmem:[%s2387_s26] sm:$0xff]   ;;  %1561 = vmatprep.subr.bf16.mxu1 %v1824_v38  ;;  %v1829_v43 = vld [vmem:[%s2387_s26 + $0x8] sm:$0xff]   ;;  %v1833_v47 = vld [vmem:[%s2387_s26 + $0x10] sm:$0xff]   ;;  %s1302_s16 = scalar_lea.sflag (%p460_p11), [#allocation6], %s2313_s22  ;;  %s1965_s11 = scalar_lea.vmem (%p460_p11), %s2538_s25, 1024 }
  0xb5   : >> { %v1826_v40 = vld [vmem:[%s2387_s26 + $0x80] sm:$0xff]   ;;  %1522 = vmatpush3.bf16.msra.mxu0 %v1825_v39  ;;  %v1830_v44 = vld [vmem:[%s2387_s26 + $0x88] sm:$0xff]   ;;  %v1834_v48 = vld [vmem:[%s2387_s26 + $0x90] sm:$0xff]   ;;  %p1966_p0 = scmp.ne.s32.totalorder (%p460_p11), %s2538_s25, %s1965_s11  ;;  %p2615_p1 = scmp.ne.s32.totalorder (%p460_p11), %s2602_s7, 0 }
  0xb6   : >> { %1562 = vmatpush3.bf16.msra.mxu1 %v1826_v40  ;;  %1523 = vmatprep.subr.bf16.mxu0 %v1827_v41  ;;  %v1835_v49 = vld [vmem:[%s2387_s26 + $0x58] sm:$0xff]   ;;  %v1839_v53 = vld [vmem:[%s2387_s26 + $0x60] sm:$0xff]   ;;  %v1843_v57 = vld [vmem:[%s2387_s26 + $0x68] sm:$0xff]   ;;  %s2117_s17 = smov (%p460_p11), [#allocation10]  }
  0xb7   : >> { %1563 = vmatprep.subr.bf16.mxu1 %v1828_v42  ;;  %v1836_v50 = vld [vmem:[%s2387_s26 + $0xd8] sm:$0xff]   ;;  %v1840_v54 = vld [vmem:[%s2387_s26 + $0xe0] sm:$0xff]   ;;  %v1844_v58 = vld [vmem:[%s2387_s26 + $0xe8] sm:$0xff]   ;;  %p1967_p3 = pnand (%p460_p11), %p1966_p0, %p2615_p1  ;;  %s1969_s24 = sshll.u32 (%p460_p11), %s2117_s17, 4  ;;  %s1970_s24 = int_to_ptr.vmem [resolvable:$false] %s1969_s24 }
  0xb8   : >> { %v1837_v51 = vld [vmem:[%s2387_s26 + $0x18] sm:$0xff]   ;;  %v1841_v55 = vld [vmem:[%s2387_s26 + $0x20] sm:$0xff]   ;;  %v1845_v59 = vld [vmem:[%s2387_s26 + $0x28] sm:$0xff]   ;;  %s1971_s29 = scalar_lea.vmem (%p460_p11), %s1970_s24, 2048  ;;  %p1972_p9 = scmp.lt.s32.totalorder (%p460_p11), %s2538_s25, %s1970_s24 }
  0xb9   : >> { %1524 = vmatpush3.bf16.msra.mxu0 %v1829_v43  ;;  %v1838_v52 = vld [vmem:[%s2387_s26 + $0x98] sm:$0xff]   ;;  %v1842_v56 = vld [vmem:[%s2387_s26 + $0xa0] sm:$0xff]   ;;  %v1846_v60 = vld [vmem:[%s2387_s26 + $0xa8] sm:$0xff]   ;;  %p1968_p7 = pneg (%p460_p11), %p1967_p3  ;;  %p1973_p12 = scmp.lt.s32.totalorder (%p460_p11), %s1971_s29, %s1965_s11 }
  0xba   : >> { %1564 = vmatpush3.bf16.msra.mxu1 %v1830_v44  ;;  %1525 = vmatprep.subr.bf16.mxu0 %v1831_v45  ;;  %v1847_v61 = vld [vmem:[%s2387_s26 + $0x70] sm:$0xff]   ;;  %v1851_v1 = vld [vmem:[%s2387_s26 + $0x78] sm:$0xff]   ;;  %v476_v5 = vld [vmem:[%s2422_s28 + $0x8] sm:$0xff] }
  0xbb   : >> { %1565 = vmatprep.subr.bf16.mxu1 %v1832_v46  ;;  %v1848_v62 = vld [vmem:[%s2387_s26 + $0xf0] sm:$0xff]   ;;  %v1852_v2 = vld [vmem:[%s2387_s26 + $0xf8] sm:$0xff]   ;;  %v483_v6 = vld [vmem:[%s2422_s28 + $0x40] sm:$0xff]  ;;  %p1974_p2 = por (%p460_p11), %p1973_p12, %p1972_p9 }
  0xbc   : >> { %v1849_v63 = vld [vmem:[%s2387_s26 + $0x30] sm:$0xff]   ;;  %v1853_v3 = vld [vmem:[%s2387_s26 + $0x38] sm:$0xff]   ;;  %v532_v8 = vpack.c.bf16 %v483_v6, %v476_v5  ;;  %v475_v10 = vld [vmem:[%s2422_s28] sm:$0xff] }
  0xbd   : >> { %1526 = vmatpush3.bf16.msra.mxu0 %v1833_v47  ;;  %v1850_v0 = vld [vmem:[%s2387_s26 + $0xb0] sm:$0xff]   ;;  %v1854_v4 = vld [vmem:[%s2387_s26 + $0xb8] sm:$0xff]   ;;  %v484_v15 = vld [vmem:[%s2422_s28 + $0x48] sm:$0xff]  ;;  %p1975_p13 = pnand (%p460_p11), %p1974_p2, %p1968_p7 }
  0xbe   : >> { %1566 = vmatpush3.bf16.msra.mxu1 %v1834_v48  ;;  %1527 = vmatprep.subr.bf16.mxu0 %v1835_v49  ;;  %v478_v7 = vld [vmem:[%s2422_s28 + $0x18] sm:$0xff]  ;;  %v485_v9 = vld [vmem:[%s2422_s28 + $0x50] sm:$0xff]  ;;  %v1855_v17 = vld [vmem:[%s2387_s26 + $0x140] sm:$0xff]  }
  0xbf   : >> { %1567 = vmatprep.subr.bf16.mxu1 %v1836_v50  ;;  %v482_v11 = vld [vmem:[%s2422_s28 + $0x38] sm:$0xff]  ;;  %v534_v12 = vpack.c.bf16 %v485_v9, %v478_v7  ;;  %v477_v14 = vld [vmem:[%s2422_s28 + $0x10] sm:$0xff]  ;;  %1042 = vmatprep.mubr.bf16.mxu0 %v532_v8  ;;  %v1856_v18 = vld [vmem:[%s2387_s26 + $0x100] sm:$0xff]  }
  0xc0   : >> { %v531_v13 = vpack.c.bf16 %v482_v11, %v475_v10  ;;  %v533_v16 = vpack.c.bf16 %v484_v15, %v477_v14  ;;  %v1857_v19 = vld [vmem:[%s2387_s26 + $0x148] sm:$0xff]   ;;  %v1858_v20 = vld [vmem:[%s2387_s26 + $0x180] sm:$0xff]   ;;  %v490_v22 = vld [vmem:[%s2422_s28 + $0x78] sm:$0xff] }
  0xc1   : >> { %1528 = vmatpush3.bf16.msra.mxu0 %v1837_v51  ;;  %1107 = vmatprep.mubr.bf16.mxu1 %v534_v12  ;;  %v1859_v21 = vld [vmem:[%s2387_s26 + $0x108] sm:$0xff]   ;;  %v497_v23 = vld [vmem:[%s2422_s28 + $0xb0] sm:$0xff]  ;;  %v499_v25 = vld [vmem:[%s2422_s28 + $0xc0] sm:$0xff] }
  0xc2   : >> { %1568 = vmatpush3.bf16.msra.mxu1 %v1838_v52  ;;  %1529 = vmatprep.subr.bf16.mxu0 %v1839_v53  ;;  %v492_v24 = vld [vmem:[%s2422_s28 + $0x88] sm:$0xff]  ;;  %v539_v26 = vpack.c.bf16 %v497_v23, %v490_v22  ;;  %v489_v28 = vld [vmem:[%s2422_s28 + $0x70] sm:$0xff]  ;;  %v491_v38 = vld [vmem:[%s2422_s28 + $0x80] sm:$0xff] }
  0xc3   : >> { %1569 = vmatprep.subr.bf16.mxu1 %v1840_v54  ;;  %v541_v27 = vpack.c.bf16 %v499_v25, %v492_v24  ;;  %v496_v37 = vld [vmem:[%s2422_s28 + $0xa8] sm:$0xff]  ;;  %v498_v40 = vld [vmem:[%s2422_s28 + $0xb8] sm:$0xff]  ;;  %v1860_v42 = vld [vmem:[%s2387_s26 + $0x150] sm:$0xff]  }
  0xc4   : >> { %v538_v39 = vpack.c.bf16 %v496_v37, %v489_v28  ;;  %v540_v41 = vpack.c.bf16 %v498_v40, %v491_v38  ;;  %v1861_v43 = vld [vmem:[%s2387_s26 + $0x188] sm:$0xff]   ;;  %v1862_v44 = vld [vmem:[%s2387_s26 + $0x110] sm:$0xff]   ;;  %v1863_v45 = vld [vmem:[%s2387_s26 + $0x158] sm:$0xff]  }
  0xc5   : >> { %1530 = vmatpush3.bf16.msra.mxu0 %v1841_v55  ;;  %v1864_v46 = vld [vmem:[%s2387_s26 + $0x190] sm:$0xff]   ;;  %v1865_v47 = vld [vmem:[%s2387_s26 + $0x118] sm:$0xff]   ;;  %v504_v48 = vld [vmem:[%s2422_s28 + $0xe8] sm:$0xff] }
  0xc6   : >> { %1570 = vmatpush3.bf16.msra.mxu1 %v1842_v56  ;;  %1531 = vmatprep.subr.bf16.mxu0 %v1843_v57  ;;  %v511_v49 = vld [vmem:[%s2422_s28 + $0x120] sm:$0xff]  ;;  %v506_v51 = vld [vmem:[%s2422_s28 + $0xf8] sm:$0xff]  ;;  %v513_v52 = vld [vmem:[%s2422_s28 + $0x130] sm:$0xff] }
  0xc7   : >> { %1571 = vmatprep.subr.bf16.mxu1 %v1844_v58  ;;  %v546_v50 = vpack.c.bf16 %v511_v49, %v504_v48  ;;  %v503_v53 = vld [vmem:[%s2422_s28 + $0xe0] sm:$0xff]  ;;  %v548_v54 = vpack.c.bf16 %v513_v52, %v506_v51  ;;  %v510_v55 = vld [vmem:[%s2422_s28 + $0x118] sm:$0xff]  ;;  %v505_v56 = vld [vmem:[%s2422_s28 + $0xf0] sm:$0xff] }
  0xc8   : >> { %v512_v57 = vld [vmem:[%s2422_s28 + $0x128] sm:$0xff]  ;;  %v545_v58 = vpack.c.bf16 %v510_v55, %v503_v53  ;;  %v527_v6 = vld [vmem:[%s2422_s28 + $0x1a0] sm:$0xff]  ;;  %v517_v7 = vld [vmem:[%s2422_s28 + $0x150] sm:$0xff] }
  0xc9   : >> { %1532 = vmatpush3.bf16.msra.mxu0 %v1845_v59  ;;  %v547_v59 = vpack.c.bf16 %v512_v57, %v505_v56  ;;  %v524_v8 = vld [vmem:[%s2422_s28 + $0x188] sm:$0xff]  ;;  %v519_v11 = vld [vmem:[%s2422_s28 + $0x160] sm:$0xff]  ;;  %v526_v12 = vld [vmem:[%s2422_s28 + $0x198] sm:$0xff] }
  0xca   : >> { %1572 = vmatpush3.bf16.msra.mxu1 %v1846_v60  ;;  %1533 = vmatprep.subr.bf16.mxu0 %v1847_v61  ;;  %v1866_v60 = vld [vmem:[%s2387_s26 + $0x160] sm:$0xff]   ;;  %v1867_v61 = vld [vmem:[%s2387_s26 + $0x198] sm:$0xff]   ;;  %v552_v10 = vpack.c.bf16 %v524_v8, %v517_v7  ;;  %v1872_v14 = vld [vmem:[%s2387_s26 + $0x170] sm:$0xff]  }
  0xcb   : >> { %1573 = vmatprep.subr.bf16.mxu1 %v1848_v62  ;;  %v1868_v62 = vld [vmem:[%s2387_s26 + $0x120] sm:$0xff]   ;;  %v1873_v15 = vld [vmem:[%s2387_s26 + $0x1a8] sm:$0xff]   ;;  %v486_v23 = vld [vmem:[%s2422_s28 + $0x58] sm:$0xff] }
  0xcc   : >> { %v479_v22 = vld [vmem:[%s2422_s28 + $0x20] sm:$0xff]  ;;  %v488_v28 = vld [vmem:[%s2422_s28 + $0x68] sm:$0xff]  ;;  %v494_v40 = vld [vmem:[%s2422_s28 + $0x98] sm:$0xff] }
  0xcd   : >> { %1534 = vmatpush3.bf16.msra.mxu0 %v1849_v63  ;;  %v1869_v63 = vld [vmem:[%s2387_s26 + $0x168] sm:$0xff]   ;;  %v535_v25 = vpack.c.bf16 %v486_v23, %v479_v22  ;;  %v495_v37 = vld [vmem:[%s2422_s28 + $0xa0] sm:$0xff]  ;;  %v514_v57 = vld [vmem:[%s2422_s28 + $0x138] sm:$0xff] }
  0xce   : >> { %1574 = vmatpush3.bf16.msra.mxu1 %v1850_v0  ;;  %1535 = vmatprep.subr.bf16.mxu0 %v1851_v1  ;;  %v1870_v0 = vld [vmem:[%s2387_s26 + $0x1a0] sm:$0xff]   ;;  %v1871_v1 = vld [vmem:[%s2387_s26 + $0x128] sm:$0xff]  }
  0xcf   : >> { %1575 = vmatprep.subr.bf16.mxu1 %v1852_v2  ;;  %v518_v2 = vld [vmem:[%s2422_s28 + $0x158] sm:$0xff]  ;;  %v508_v48 = vld [vmem:[%s2422_s28 + $0x108] sm:$0xff]  ;;  %v515_v49 = vld [vmem:[%s2422_s28 + $0x140] sm:$0xff] }
  0xd0   : >> { %v550_v52 = vpack.c.bf16 %v515_v49, %v508_v48  ;;  %v523_v53 = vld [vmem:[%s2422_s28 + $0x180] sm:$0xff] }
  0xd1   : >> { %1536 = vmatpush3.bf16.msra.mxu0 %v1853_v3  ;;  %v525_v3 = vld [vmem:[%s2422_s28 + $0x190] sm:$0xff]  ;;  %v507_v56 = vld [vmem:[%s2422_s28 + $0x100] sm:$0xff] }
  0xd2   : >> { %1576 = vmatpush3.bf16.msra.mxu1 %v1854_v4  ;;  %1601 = vmatprep.subr.bf16.mxu0 %v1855_v17  ;;  %v520_v4 = vld [vmem:[%s2422_s28 + $0x168] sm:$0xff]  ;;  %v553_v5 = vpack.c.bf16 %v525_v3, %v518_v2  ;;  %v1875_v17 = vld [vmem:[%s2387_s26 + $0x178] sm:$0xff]  }
  0xd3   : >> { %1653 = vmatprep.subr.bf16.mxu1 %v1858_v20  ;;  %v555_v9 = vpack.c.bf16 %v527_v6, %v520_v4 }
  0xd4   : >> { %1043 = vmatmul.mubr.bf16.vlgmr.msra.gmra.mrb[0].mxu0 %v531_v13  ;;  %v554_v13 = vpack.c.bf16 %v526_v12, %v519_v11 }
  0xd5   : >> { %1108 = vmatmul.mubr.bf16.vlgmr.msra.gmra.mrb[0].mxu1 %v533_v16  ;;  %1602 = vmatpush3.bf16.msra.mxu0 %v1856_v18  ;;  %v1874_v16 = vld [vmem:[%s2387_s26 + $0x130] sm:$0xff]  }
  0xd6   : >> { %1603 = vmatprep.subr.bf16.mxu0 %v1857_v19  ;;  %1654 = vmatpush3.bf16.msra.mxu1 %v1858_v20  ;;  %v1876_v18 = vld [vmem:[%s2387_s26 + $0x1b0] sm:$0xff]   ;;  %v1877_v19 = vld [vmem:[%s2387_s26 + $0x138] sm:$0xff]   ;;  %v480_v20 = vld [vmem:[%s2422_s28 + $0x28] sm:$0xff] }
  0xd7   : >> { %1050 = vmatprep.mubr.bf16.mxu0 %v539_v26  ;;  %1115 = vmatprep.mubr.bf16.mxu1 %v541_v27  ;;  %v1878_v26 = vld [vmem:[%s2387_s26 + $0x1b8] sm:$0xff]   ;;  %v481_v27 = vld [vmem:[%s2422_s28 + $0x30] sm:$0xff] }
  0xd8   : >> { %1655 = vmatprep.subr.bf16.mxu1 %v1861_v43  ;;  %v537_v38 = vpack.c.bf16 %v488_v28, %v481_v27 }
  0xd9   : >> { %1604 = vmatpush3.bf16.msra.mxu0 %v1859_v21  ;;  %v487_v21 = vld [vmem:[%s2422_s28 + $0x60] sm:$0xff] }
  0xda   : >> { %1605 = vmatprep.subr.bf16.mxu0 %v1860_v42  ;;  %1656 = vmatpush3.bf16.msra.mxu1 %v1861_v43  ;;  %v536_v24 = vpack.c.bf16 %v487_v21, %v480_v20 }
  0xdb   : >> { %1657 = vmatprep.subr.bf16.mxu1 %v1864_v46 }
  0xdc   : >> { %1051 = vmatmul.mubr.bf16.gmra.mrb[4].mxu0 %v538_v39  ;;  %v502_v39 = vld [vmem:[%s2422_s28 + $0xd8] sm:$0xff] }
  0xdd   : >> { %1116 = vmatmul.mubr.bf16.gmra.mrb[4].mxu1 %v540_v41  ;;  %1606 = vmatpush3.bf16.msra.mxu0 %v1862_v44  ;;  %v501_v41 = vld [vmem:[%s2422_s28 + $0xd0] sm:$0xff]  ;;  %v544_v43 = vpack.c.bf16 %v502_v39, %v495_v37 }
  0xde   : >> { %1607 = vmatprep.subr.bf16.mxu0 %v1863_v45  ;;  %1658 = vmatpush3.bf16.msra.mxu1 %v1864_v46  ;;  %v543_v42 = vpack.c.bf16 %v501_v41, %v494_v40  ;;  %v493_v44 = vld [vmem:[%s2422_s28 + $0x90] sm:$0xff]  ;;  %v500_v45 = vld [vmem:[%s2422_s28 + $0xc8] sm:$0xff] }
  0xdf   : >> { %1058 = vmatprep.mubr.bf16.mxu0 %v546_v50  ;;  %1123 = vmatprep.mubr.bf16.mxu1 %v548_v54  ;;  %v509_v46 = vld [vmem:[%s2422_s28 + $0x110] sm:$0xff]  ;;  %v542_v51 = vpack.c.bf16 %v500_v45, %v493_v44  ;;  %v530_v54 = vld [vmem:[%s2422_s28 + $0x1b8] sm:$0xff] }
  0xe0   : >> { %1659 = vmatprep.subr.bf16.mxu1 %v1867_v61  ;;  %v558_v55 = vpack.c.bf16 %v530_v54, %v523_v53 }
  0xe1   : >> { %1608 = vmatpush3.bf16.msra.mxu0 %v1865_v47  ;;  %v516_v47 = vld [vmem:[%s2422_s28 + $0x148] sm:$0xff] }
  0xe2   : >> { %1609 = vmatprep.subr.bf16.mxu0 %v1866_v60  ;;  %1660 = vmatpush3.bf16.msra.mxu1 %v1867_v61  ;;  %v551_v50 = vpack.c.bf16 %v516_v47, %v509_v46  ;;  %v549_v60 = vpack.c.bf16 %v514_v57, %v507_v56 }
  0xe3   : >> { %1661 = vmatprep.subr.bf16.mxu1 %v1870_v0 }
  0xe4   : >> { %1059 = vmatmul.mubr.bf16.gmra.mrb[8].mxu0 %v545_v58  ;;  %v522_v58 = vld [vmem:[%s2422_s28 + $0x178] sm:$0xff] }
  0xe5   : >> { %1124 = vmatmul.mubr.bf16.gmra.mrb[8].mxu1 %v547_v59  ;;  %1610 = vmatpush3.bf16.msra.mxu0 %v1868_v62  ;;  %v529_v59 = vld [vmem:[%s2422_s28 + $0x1b0] sm:$0xff] }
  0xe6   : >> { %1611 = vmatprep.subr.bf16.mxu0 %v1869_v63  ;;  %1662 = vmatpush3.bf16.msra.mxu1 %v1870_v0  ;;  %v557_v61 = vpack.c.bf16 %v529_v59, %v522_v58  ;;  %v521_v62 = vld [vmem:[%s2422_s28 + $0x170] sm:$0xff]  ;;  %v528_v63 = vld [vmem:[%s2422_s28 + $0x1a8] sm:$0xff] }
  0xe7   : >> { %1066 = vmatprep.mubr.bf16.mxu0 %v553_v5  ;;  %1131 = vmatprep.mubr.bf16.mxu1 %v555_v9  ;;  %v556_v0 = vpack.c.bf16 %v528_v63, %v521_v62 }
  0xe8   : >> { %1663 = vmatprep.subr.bf16.mxu1 %v1873_v15 }
  0xe9   : >> { %1612 = vmatpush3.bf16.msra.mxu0 %v1871_v1 }
  0xea   : >> { %1613 = vmatprep.subr.bf16.mxu0 %v1872_v14  ;;  %1664 = vmatpush3.bf16.msra.mxu1 %v1873_v15 }
  0xeb   : >> { %1665 = vmatprep.subr.bf16.mxu1 %v1876_v18 }
  0xec   : >> { %1067 = vmatmul.mubr.bf16.gmra.mrb[12].mxu0 %v552_v10 }
  0xed   : >> { %1132 = vmatmul.mubr.bf16.gmra.mrb[12].mxu1 %v554_v13  ;;  %1614 = vmatpush3.bf16.msra.mxu0 %v1874_v16 }
  0xee   : >> { %1615 = vmatprep.subr.bf16.mxu0 %v1875_v17  ;;  %1666 = vmatpush3.bf16.msra.mxu1 %v1876_v18 }
  0xef   : >> { %1172 = vmatprep.mubr.bf16.mxu0 %v536_v24  ;;  %1667 = vmatprep.subr.bf16.mxu1 %v1878_v26 }
  0xf0   : >> { %1669 = vmatprep.mubr.bf16.mxu1 %v537_v38 }
  0xf1   : >> { %1616 = vmatpush3.bf16.msra.mxu0 %v1877_v19 }
  0xf2   : >> { %1668 = vmatpush3.bf16.msra.mxu1 %v1878_v26 }
  0xf4   : >> { %1173 = vmatmul.mubr.bf16.vlgmr.msra.gmra.mrb[16].mxu0 %v535_v25 }
  0xf5   : >> { %1180 = vmatprep.mubr.bf16.mxu0 %v543_v42  ;;  %1670 = vmatmul.mubr.bf16.vlgmr.msra.gmra.mrb[16].mxu1 %v544_v43 }
  0xf6   : >> { %1673 = vmatprep.mubr.bf16.mxu1 %v551_v50 }
  0xfc   : >> { %1181 = vmatmul.mubr.bf16.gmra.mrb[20].mxu0 %v542_v51 }
  0xfd   : >> { %1188 = vmatprep.mubr.bf16.mxu0 %v550_v52  ;;  %1674 = vmatmul.mubr.bf16.gmra.mrb[20].mxu1 %v558_v55 }
 0x104   : >> { %1189 = vmatmul.mubr.bf16.gmra.mrb[24].mxu0 %v549_v60 }
 0x105   : >> { %1196 = vmatprep.mubr.bf16.mxu0 %v557_v61 }
 0x10c   : >> { %1197 = vmatmul.mubr.bf16.gmra.mrb[28].mxu0 %v556_v0 }
 0x1a7   : >> { %v1537_v1 = vpop.f32.mrb[0].mxu0 }
 0x1a8   : >> { %v1577_v2 = vpop.f32.mrb[0].mxu1  ;;  %v1538_v3 = vpop.f32.mrb[1].mxu0 }
 0x1a9   : >> { %v1539_v4 = vadd.f32 %v1538_v3, %v1537_v1  ;;  %v1578_v5 = vpop.f32.mrb[1].mxu1  ;;  %v1540_v6 = vpop.f32.mrb[2].mxu0 }
 0x1aa   : >> { %v1579_v7 = vadd.f32 %v1578_v5, %v1577_v2  ;;  %v1580_v8 = vpop.f32.mrb[2].mxu1  ;;  %v1541_v9 = vpop.f32.mrb[3].mxu0 }
 0x1ab   : >> { %v1542_v10 = vadd.f32 %v1541_v9, %v1540_v6  ;;  %v1581_v11 = vpop.f32.mrb[3].mxu1 }
 0x1ac   : >> { %v1110_v12 = vadd.f32 %v1579_v7, %v1539_v4  ;;  %v1582_v13 = vadd.f32 %v1581_v11, %v1580_v8 }
 0x1ae   : >> { %v1113_v14 = vadd.f32 %v1582_v13, %v1542_v10 }
 0x1af   : >> { %v1543_v15 = vpop.f32.mrb[4].mxu0 }
 0x1b0   : >> { %v1583_v16 = vpop.f32.mrb[4].mxu1  ;;  %v1544_v17 = vpop.f32.mrb[5].mxu0 }
 0x1b1   : >> { %v1545_v18 = vadd.f32 %v1544_v17, %v1543_v15  ;;  %v1584_v19 = vpop.f32.mrb[5].mxu1  ;;  %v1546_v20 = vpop.f32.mrb[6].mxu0 }
 0x1b2   : >> { %v1585_v21 = vadd.f32 %v1584_v19, %v1583_v16  ;;  %v1586_v22 = vpop.f32.mrb[6].mxu1  ;;  %v1547_v23 = vpop.f32.mrb[7].mxu0 }
 0x1b3   : >> { %v1548_v24 = vadd.f32 %v1547_v23, %v1546_v20  ;;  %v1587_v25 = vpop.f32.mrb[7].mxu1 }
 0x1b4   : >> { %v1118_v26 = vadd.f32 %v1585_v21, %v1545_v18  ;;  %v1588_v27 = vadd.f32 %v1587_v25, %v1586_v22 }
 0x1b6   : >> { %v1121_v28 = vadd.f32 %v1588_v27, %v1548_v24 }
 0x1b7   : >> { %v1549_v37 = vpop.f32.mrb[8].mxu0 }
 0x1b8   : >> { %v1589_v38 = vpop.f32.mrb[8].mxu1  ;;  %v1550_v39 = vpop.f32.mrb[9].mxu0 }
 0x1b9   : >> { %v1590_v40 = vpop.f32.mrb[9].mxu1  ;;  %v1551_v41 = vadd.f32 %v1550_v39, %v1549_v37  ;;  %v1552_v43 = vpop.f32.mrb[10].mxu0 }
 0x1ba   : >> { %v1591_v42 = vadd.f32 %v1590_v40, %v1589_v38  ;;  %v1592_v44 = vpop.f32.mrb[10].mxu1  ;;  %v1553_v45 = vpop.f32.mrb[11].mxu0 }
 0x1bb   : >> { %v1593_v46 = vpop.f32.mrb[11].mxu1  ;;  %v1554_v48 = vadd.f32 %v1553_v45, %v1552_v43 }
 0x1bc   : >> { %v1126_v47 = vadd.f32 %v1591_v42, %v1551_v41  ;;  %v1594_v49 = vadd.f32 %v1593_v46, %v1592_v44 }
 0x1be   : >> { %v1129_v50 = vadd.f32 %v1594_v49, %v1554_v48 }
 0x1bf   : >> { %v1555_v51 = vpop.f32.mrb[12].mxu0 }
 0x1c0   : >> { %v1595_v52 = vpop.f32.mrb[12].mxu1  ;;  %v1556_v53 = vpop.f32.mrb[13].mxu0 }
 0x1c1   : >> { %v1557_v54 = vadd.f32 %v1556_v53, %v1555_v51  ;;  %v1596_v55 = vpop.f32.mrb[13].mxu1  ;;  %v1558_v56 = vpop.f32.mrb[14].mxu0 }
 0x1c2   : >> { %v1597_v57 = vadd.f32 %v1596_v55, %v1595_v52  ;;  %v1598_v58 = vpop.f32.mrb[14].mxu1  ;;  %v1559_v59 = vpop.f32.mrb[15].mxu0 }
 0x1c3   : >> { %v1560_v60 = vadd.f32 %v1559_v59, %v1558_v56  ;;  %v1599_v61 = vpop.f32.mrb[15].mxu1 }
 0x1c4   : >> { %v1134_v62 = vadd.f32 %v1597_v57, %v1557_v54  ;;  %v1600_v63 = vadd.f32 %v1599_v61, %v1598_v58 }
 0x1c6   : >> { %v1137_v0 = vadd.f32 %v1600_v63, %v1560_v60 }
 0x1c7   : >> { %v1617_v1 = vpop.f32.mrb[16].mxu0 }
 0x1c8   : >> { %v1618_v2 = vpop.f32.mrb[17].mxu0  ;;  %v1671_v7 = vpop.f32.mrb[16].mxu1 }
 0x1c9   : >> { %v1619_v3 = vadd.f32 %v1618_v2, %v1617_v1  ;;  %v1620_v4 = vpop.f32.mrb[18].mxu0  ;;  %v1239_v9 = vpop.f32.mrb[17].mxu1 }
 0x1ca   : >> { %v1621_v5 = vpop.f32.mrb[19].mxu0  ;;  %v1672_v11 = vpop.f32.mrb[18].mxu1 }
 0x1cb   : >> { %v1622_v6 = vadd.f32 %v1621_v5, %v1620_v4  ;;  %v1175_v8 = vadd.f32 %v1619_v3, %v1110_v12  ;;  %v1242_v15 = vpop.f32.mrb[19].mxu1 }
 0x1cd   : >> { %v1240_v10 = vadd.f32 %v1239_v9, %v1175_v8  ;;  %v1178_v13 = vadd.f32 %v1622_v6, %v1113_v14 }
 0x1cf   : >> { %v1270_v16 = vadd.f32 %v2103_v36, %v1240_v10   ;;  %v1243_v17 = vadd.f32 %v1242_v15, %v1178_v13  ;;  %v1623_v18 = vpop.f32.mrb[20].mxu0 }
 0x1d0   : >> { %v1624_v19 = vpop.f32.mrb[21].mxu0  ;;  %v1675_v27 = vpop.f32.mrb[20].mxu1 }
 0x1d1   : >> { %v1271_v20 = vadd.f32 %v2099_v35, %v1243_v17   ;;  %v1625_v21 = vadd.f32 %v1624_v19, %v1623_v18  ;;  %v1626_v22 = vpop.f32.mrb[22].mxu0  ;;  %v1255_v37 = vpop.f32.mrb[21].mxu1 }
 0x1d2   : >> { %v1627_v23 = vpop.f32.mrb[23].mxu0  ;;  %v1676_v39 = vpop.f32.mrb[22].mxu1 }
 0x1d3   : >> { %v1183_v24 = vadd.f32 %v1625_v21, %v1118_v26  ;;  %v1628_v25 = vadd.f32 %v1627_v23, %v1626_v22  ;;  %v1258_v40 = vpop.f32.mrb[23].mxu1 }
 0x1d5   : >> { %v1248_v12 = vadd.f32 %v1671_v7, %v1183_v24  ;;  %v1186_v38 = vadd.f32 %v1628_v25, %v1121_v28 }
 0x1d7   : >> { %v1272_v14 = vadd.f32 %v2095_v34, %v1248_v12   ;;  %v1251_v41 = vadd.f32 %v1672_v11, %v1186_v38  ;;  %v1629_v36 = vpop.f32.mrb[24].mxu0 }
 0x1d8   : >> { %v1630_v42 = vpop.f32.mrb[25].mxu0 }
 0x1d9   : >> { %v1273_v43 = vadd.f32 %v2091_v33, %v1251_v41   ;;  %v1631_v44 = vadd.f32 %v1630_v42, %v1629_v36  ;;  %v1632_v35 = vpop.f32.mrb[26].mxu0  ;;  %v2614_v36 = vmov %v1270_v16 }
 0x1da   : >> { %v1633_v45 = vpop.f32.mrb[27].mxu0 }
 0x1db   : >> { %v1634_v46 = vadd.f32 %v1633_v45, %v1632_v35  ;;  %v1191_v48 = vadd.f32 %v1631_v44, %v1126_v47  ;;  %v2613_v35 = vmov %v1271_v20 }
 0x1dd   : >> { %v1256_v26 = vadd.f32 %v1255_v37, %v1191_v48  ;;  %v1194_v49 = vadd.f32 %v1634_v46, %v1129_v50  ;;  %v1511_v50 = vld [vmem:[#allocation9] ss:$0 sm:$0xff] (%p460_p11) }
 0x1de   : > { %v1286_v63 = vadd.f32 (%p460_p11), %v1511_v50, %v1271_v20  ;;  %v1288_v1 = vadd.f32 (%p460_p11), %v1511_v50, %v1273_v43 }
 0x1df   : >> { %v1274_v51 = vadd.f32 %v2087_v32, %v1256_v26   ;;  %v1259_v52 = vadd.f32 %v1258_v40, %v1194_v49  ;;  %v1635_v28 = vpop.f32.mrb[28].mxu0 }
 0x1e0   : >> { %v1636_v53 = vpop.f32.mrb[29].mxu0  ;;  %1294 = vst [vmem:[%s2339_s18 + $0x8] sm:$0xff] (%p460_p11), %v1286_v63  ;;  %1296 = vst [vmem:[%s2339_s18 + $0x18] sm:$0xff] (%p460_p11), %v1288_v1 }
 0x1e1   : >> { %v1275_v54 = vadd.f32 %v2083_v31, %v1259_v52   ;;  %v1637_v34 = vadd.f32 %v1636_v53, %v1635_v28  ;;  %v1638_v55 = vpop.f32.mrb[30].mxu0  ;;  %v2610_v32 = vmov %v1274_v51 }
 0x1e2   : >> { %v1639_v56 = vpop.f32.mrb[31].mxu0 }
 0x1e3   : >> { %v1199_v57 = vadd.f32 %v1637_v34, %v1134_v62  ;;  %v1640_v58 = vadd.f32 %v1639_v56, %v1638_v55  ;;  %v2609_v31 = vmov %v1275_v54  ;;  %v2612_v34 = vmov %v1272_v14 }
 0x1e4   : > { %v1285_v62 = vadd.f32 (%p460_p11), %v1511_v50, %v1270_v16 }
 0x1e5   : >> { %v1264_v33 = vadd.f32 %v1675_v27, %v1199_v57  ;;  %v1202_v59 = vadd.f32 %v1640_v58, %v1137_v0  ;;  %462 = sbr.rel (!%p460_p11) target bundleno = 175 (0xaf), region = 95  ;;  %v1287_v0 = vadd.f32 (%p460_p11), %v1511_v50, %v1272_v14 }
 0x1e6   : > { %1293 = vst [vmem:[%s2339_s18] sm:$0xff] (%p460_p11), %v1285_v62 }
 0x1e7   : >> { %v1276_v60 = vadd.f32 %v2079_v30, %v1264_v33   ;;  %v1267_v61 = vadd.f32 %v1676_v39, %v1202_v59  ;;  %v2611_v33 = vmov %v1273_v43  ;;  %1295 = vst [vmem:[%s2339_s18 + $0x10] sm:$0xff] (%p460_p11), %v1287_v0 }
 0x1e9   : >> { %v1277_v47 = vadd.f32 %v2075_v29, %v1267_v61   ;;  %v2608_v30 = vmov %v1276_v60  ;;  %v1291_v31 = vadd.f32 (%p460_p11), %v1511_v50, %v1276_v60 }
 0x1ea   : > { %v1290_v30 = vadd.f32 (%p460_p11), %v1511_v50, %v1275_v54 }
 0x1eb   : >> { %v2607_v29 = vmov %v1277_v47  ;;  %v1292_v32 = vadd.f32 (%p460_p11), %v1511_v50, %v1277_v47  ;;  %1299 = vst [vmem:[%s2339_s18 + $0x30] sm:$0xff] (%p460_p11), %v1291_v31 }
 0x1ec   : > { %v1289_v29 = vadd.f32 %v1511_v50, %v1274_v51  ;;  %1298 = vst [vmem:[%s2339_s18 + $0x28] sm:$0xff] %v1290_v30 }
 0x1ed   : > { %1300 = vst [vmem:[%s2339_s18 + $0x38] sm:$0xff] %v1292_v32 }
 0x1ee   : > { %1297 = vst [vmem:[%s2339_s18 + $0x20] sm:$0xff] %v1289_v29 }
 0x1ef   : > { %1978 = shalt.err (!%p1975_p13)
}
 0x1f0   : > { %s1979_s30 = scalar_lea.hbm %s2535_s10, 1024  ;;  %s1983_s20 = scalar_lea.hbm %s2593_s3, 2048 }
 0x1f1   : > { %p1980_p6 = scmp.ne.s32.totalorder %s2535_s10, %s1979_s30  ;;  %p1984_p5 = scmp.lt.u32.totalorder %s2535_s10, %s2593_s3 }
 0x1f2   : > { %p1985_p8 = scmp.lt.u32.totalorder %s1983_s20, %s1979_s30  ;;  %p1987_p0 = scmp.lt.u32.totalorder %s1979_s30, %s2535_s10 }
 0x1f3   : > { %p1981_p10 = pnand %p1980_p6, %p2615_p1 }
 0x1f4   : > { %p1986_p11 = por %p1985_p8, %p1984_p5 }
 0x1f5   : > { %p1982_p4 = pneg %p1981_p10 }
 0x1f6   : > { %p1988_p3 = por %p1987_p0, %p1986_p11 }
 0x1f8   : > { %p1989_p7 = pnand %p1988_p3, %p1982_p4 }
 0x1fa   : > { %1992 = shalt.err (!%p1989_p7)
}
 0x1fb   : > { %s2118_s27 = smov 128   ;;  %s2119_s28 = smov 8  }
 0x1fc   : > { %1687 = dma.vmem_to_hbm [thread:$0]  (%p2615_p1), %s2538_s25, 1024, %s2535_s10, %s1302_s16, %s2118_s27, %s2118_s27, %s2119_s28  }
 0x1fd PF: > { %s1330_s23 = sand.u32 1, %s2059_s12   ;;  %p2616_p9 = scmp.ne.s32.totalorder %s2598_s19, 0 }
 0x1fe   : > { %p2617_p12 = scmp.ge.s32.totalorder %s2071_s15, 2  ;;  %s1331_s6 = scalar_lea.sflag [#allocation6], %s1330_s23 }
 0x200   : > { %p1701_p2 = pnand %p2617_p12, %p2616_p9 }
 0x202   : > { %2054 = dma.done.wait (!%p1701_p2), %s1331_s6, 1024  }
 0x203   : > { %2056 = vsyncadd (!%p1701_p2), %s1331_s6, 4294966272  ;;  %p17_p13 = scmp.ge.s32.totalorder %s2251_s5, 4   ;;  %s2618_s12 = smov %s2063_s13 }
 0x204   : > { %s2619_s13 = smov %s2067_s14  ;;  %s2620_s14 = smov %s2267_s8 }
 0x205   : > { %s2621_s15 = smov %s2251_s5  ;;  %19 = sbr.rel (!%p17_p13) target bundleno = 6 (0x6), region = 106 }
 0x20c   :  { %1336 = vsyncpa [#allocation5], 1 }
 0x20d   :  { %1338 = vsyncpa [#allocation5 + $0x1], 1 }
 0x20e   :  { %1339 = vsyncpa [#allocation8], 1 }
 0x20f   :  { %1340 = vsyncpa [#allocation6], 1 }
 0x210   :  { %1342 = vsyncpa [#allocation6 + $0x1], 1 }

</bundles_post_ra>
